<compile_context>
chip_gen: v5e
topology: v5e:2x2
jax: 0.10.0
libtpu: 0.0.40
codegen_flags: <defaults>
</compile_context>

<pallas_src>
import functools
import math

import jax
import jax.numpy as jnp
from jax.experimental import pallas as pl
from jax.experimental.pallas import tpu as pltpu

# ---- small synthetic BERT config (bert-base would be 768/12/12; scaled down) ----
VOCAB = 100
HIDDEN = 32
NUM_HEADS = 4
HEAD_DIM = HIDDEN // NUM_HEADS
INTERMEDIATE = 64
NUM_LAYERS = 2
MAX_POS = 16
NUM_CLASSES = 2
BATCH = 2
SEQ = 8
LN_EPS = 1e-12


def _layernorm(x, g, b):
    mean = jnp.mean(x, axis=-1, keepdims=True)
    var = jnp.mean((x - mean) ** 2, axis=-1, keepdims=True)
    return (x - mean) * jax.lax.rsqrt(var + LN_EPS) * g + b


# ----------------------------- fused Pallas kernel -------------------------------
def _fused_bert_kernel(emb_ref, mask_ref, wqkv_ref, wo_ref, w1_ref, w2_ref,
                       lvec_ref, cvec_ref, pool_w_ref, head_w_ref,
                       out_ref, hid_ref, *, batch, seq):
    layer = pl.program_id(0)
    num_layers = pl.num_programs(0)
    H = HIDDEN

    # Unpack the single packed per-layer vector block (one wide DMA per layer).
    bqkv = lvec_ref[0:1, 0:3 * H]          # Q part already scaled by 1/sqrt(d)
    bo = lvec_ref[1:2, 0:H]
    ln1_g = lvec_ref[2:3, 0:H]
    ln1_b = lvec_ref[3:4, 0:H]
    b1 = lvec_ref[4:5, 0:INTERMEDIATE]
    b2 = lvec_ref[5:6, 0:H]
    ln2_g = lvec_ref[6:7, 0:H]
    ln2_b = lvec_ref[7:8, 0:H]

    # Embedding LayerNorm once, into the VMEM-resident hidden state.
    @pl.when(layer == 0)
    def _():
        hid_ref[...] = _layernorm(emb_ref[...], cvec_ref[0:1, 0:H], cvec_ref[1:2, 0:H])

    h = hid_ref[...]                                     # (B*S, H) f32 carried across layers
    hb = h.astype(wqkv_ref.dtype)                        # bf16 operand for the MXU

    # Fused QKV projection: one (B*S, H) x (H, 3H) bf16 matmul, f32 accumulation.
    qkv = jnp.dot(hb, wqkv_ref[...], preferred_element_type=jnp.float32) + bqkv
    qkv_bf = qkv.astype(jnp.bfloat16)                    # bf16 copy for attention matmuls
    kT_f = qkv[:, H:2 * H].T                             # ONE whole-block K transpose / layer

    mask_full = mask_ref[...]                            # (B*S, B*S) additive bias, hoisted

    ctx_heads = []
    for hh in range(NUM_HEADS):                          # unrolled over heads
        c0 = hh * HEAD_DIM
        q_h = qkv_bf[:, c0:c0 + HEAD_DIM]
        k_h = kT_f[c0:c0 + HEAD_DIM, :].astype(jnp.bfloat16)
        v_h = qkv_bf[:, 2 * H + c0:2 * H + c0 + HEAD_DIM]
        s = jnp.dot(q_h, k_h, preferred_element_type=jnp.float32)   # scale folded into wqkv
        s = s + mask_full
        m = jnp.max(s, axis=-1, keepdims=True)
        e = jnp.exp(s - m)
        p = e * pl.reciprocal(jnp.sum(e, axis=-1, keepdims=True), approx=True)
        ctx_heads.append(jnp.dot(p.astype(jnp.bfloat16), v_h,
                                 preferred_element_type=jnp.float32))
    ctx = jnp.concatenate(ctx_heads, axis=-1).astype(wo_ref.dtype)   # (B*S, H), no scratch

    # Output projection + residual + LayerNorm.
    attn_out = jnp.dot(ctx, wo_ref[...], preferred_element_type=jnp.float32) + bo
    h1 = _layernorm(attn_out + h, ln1_g, ln1_b)

    # FFN: up-projection + GELU + down-projection + residual + LayerNorm.
    inter = jnp.dot(h1.astype(w1_ref.dtype), w1_ref[...],
                    preferred_element_type=jnp.float32) + b1
    # TODO(synk): HF BERT uses exact erf-GELU; tanh approximation used here.
    inter = jax.nn.gelu(inter, approximate=True)
    ffn = jnp.dot(inter.astype(w2_ref.dtype), w2_ref[...],
                  preferred_element_type=jnp.float32) + b2
    h2 = _layernorm(ffn + h1, ln2_g, ln2_b)
    hid_ref[...] = h2

    # Pooler (tanh dense on all B [CLS] tokens at once) + fused task heads.
    @pl.when(layer == num_layers - 1)
    def _():
        pool_b = cvec_ref[2:3, 0:H]
        head_b = cvec_ref[3:4, 0:2 * NUM_CLASSES]
        cls = jnp.concatenate(
            [hid_ref[b * seq:b * seq + 1, :] for b in range(batch)], axis=0)  # (B, H)
        pooled = jnp.tanh(
            jnp.dot(cls.astype(pool_w_ref.dtype), pool_w_ref[...],
                    preferred_element_type=jnp.float32) + pool_b)
        out_ref[...] = jnp.dot(pooled.astype(head_w_ref.dtype), head_w_ref[...],
                               preferred_element_type=jnp.float32) + head_b


# ----------------------------- params (packed / stacked layout) -------------------
def init_params(key):
    ks = iter(jax.random.split(key, 16))

    def nrm(shape):
        return 0.02 * jax.random.normal(next(ks), shape, dtype=jnp.float32)

    L, H, I, C2 = NUM_LAYERS, HIDDEN, INTERMEDIATE, 2 * NUM_CLASSES
    wdt = jnp.bfloat16                       # matmul weights bf16; accumulation f32
    scale = 1.0 / math.sqrt(HEAD_DIM)

    # QKV pre-concatenated; fold 1/sqrt(head_dim) into the Q projection (and bias).
    wqkv = nrm((L, H, 3 * H))
    wqkv = wqkv.at[:, :, :H].multiply(scale)
    bqkv = jnp.zeros((L, 3 * H), jnp.float32)
    bqkv = bqkv.at[:, :H].multiply(scale)

    # Packed per-layer small vectors: one (L, 8, 128) block, one DMA per layer.
    # rows: 0=bqkv 1=bo 2=ln1_g 3=ln1_b 4=b1 5=b2 6=ln2_g 7=ln2_b
    lvec = jnp.zeros((L, 8, 128), jnp.float32)
    lvec = lvec.at[:, 0, :3 * H].set(bqkv)
    lvec = lvec.at[:, 2, :H].set(1.0)        # ln1 gamma
    lvec = lvec.at[:, 6, :H].set(1.0)        # ln2 gamma
    # (bo, ln1_b, b1, b2, ln2_b stay zero, matching the previous init)

    # Packed constant small vectors: rows 0=emb_ln_g 1=emb_ln_b 2=pool_b 3=head_b
    cvec = jnp.zeros((8, 128), jnp.float32)
    cvec = cvec.at[0, :H].set(1.0)

    return {
        "word_emb": nrm((VOCAB, H)),
        "pos_emb": nrm((MAX_POS, H)),
        "type_emb": nrm((2, H)),
        "wqkv": wqkv.astype(wdt),
        "wo": nrm((L, H, H)).astype(wdt),
        "w1": nrm((L, H, I)).astype(wdt),
        "w2": nrm((L, I, H)).astype(wdt),
        "lvec": lvec,
        "cvec": cvec,
        "pool_w": nrm((H, H)).astype(wdt),
        "head_w": nrm((H, C2)).astype(wdt),   # class + sentiment heads fused
    }


# ----------------------------- forward (single pallas_call) -----------------------
def multi_task_bert_forward(params, input_ids, attention_mask):
    B, S = input_ids.shape
    BS = B * S
    C2 = 2 * NUM_CLASSES

    # Embedding gather stays in plain JAX (no clean Pallas equivalent at this size).
    pos_ids = jnp.arange(S)
    emb = (params["word_emb"][input_ids]
           + params["pos_emb"][pos_ids][None, :, :]
           + params["type_emb"][0][None, None, :]).astype(jnp.float32)
    emb = emb.reshape(BS, HIDDEN)                                       # batch folded

    # Full (BS, BS) additive attention bias: key-padding mask + block-diagonal batch
    # mask so batch-folded attention stays strictly per-example.
    key_bias = (1.0 - attention_mask.reshape(BS).astype(jnp.float32)) * -10000.0
    batch_ids = jnp.repeat(jnp.arange(B), S)
    same = batch_ids[:, None] == batch_ids[None, :]
    mask_full = jnp.where(same, key_bias[None, :], -10000.0)            # (BS, BS)

    kernel = functools.partial(_fused_bert_kernel, batch=B, seq=S)

    logits = pl.pallas_call(
        kernel,
        out_shape=jax.ShapeDtypeStruct((B, C2), jnp.float32),
        grid=(NUM_LAYERS,),
        in_specs=[
            pl.BlockSpec((BS, HIDDEN), lambda l: (0, 0)),                     # emb (const)
            pl.BlockSpec((BS, BS), lambda l: (0, 0)),                         # mask (const)
            pl.BlockSpec((None, HIDDEN, 3 * HIDDEN), lambda l: (l, 0, 0)),    # wqkv
            pl.BlockSpec((None, HIDDEN, HIDDEN), lambda l: (l, 0, 0)),        # wo
            pl.BlockSpec((None, HIDDEN, INTERMEDIATE), lambda l: (l, 0, 0)),  # w1
            pl.BlockSpec((None, INTERMEDIATE, HIDDEN), lambda l: (l, 0, 0)),  # w2
            pl.BlockSpec((None, 8, 128), lambda l: (l, 0, 0)),                # packed layer vecs
            pl.BlockSpec((8, 128), lambda l: (0, 0)),                         # packed const vecs
            pl.BlockSpec((HIDDEN, HIDDEN), lambda l: (0, 0)),                 # pool_w (const)
            pl.BlockSpec((HIDDEN, C2), lambda l: (0, 0)),                     # head_w (const)
        ],
        out_specs=pl.BlockSpec((B, C2), lambda l: (0, 0)),
        scratch_shapes=[
            pltpu.VMEM((BS, HIDDEN), jnp.float32),    # hidden state carried across layers
        ],
        compiler_params=pltpu.CompilerParams(
            dimension_semantics=("arbitrary",)),      # layer axis is a sequential carry
    )(emb, mask_full, params["wqkv"], params["wo"], params["w1"], params["w2"],
      params["lvec"], params["cvec"], params["pool_w"], params["head_w"])

    return logits[:, :NUM_CLASSES], logits[:, NUM_CLASSES:]


if __name__ == "__main__":
    key = jax.random.PRNGKey(0)
    pkey, ikey = jax.random.split(key)
    params = init_params(pkey)

    input_ids = jax.random.randint(ikey, (BATCH, SEQ), 0, VOCAB, dtype=jnp.int32)
    attention_mask = jnp.ones((BATCH, SEQ), dtype=jnp.int32).at[1, SEQ - 2:].set(0)

    fwd = jax.jit(multi_task_bert_forward)
    class_logits, sent_logits = fwd(params, input_ids, attention_mask)
    jax.block_until_ready((class_logits, sent_logits))

    assert class_logits.shape == (BATCH, NUM_CLASSES)
    assert sent_logits.shape == (BATCH, NUM_CLASSES)
    assert class_logits.dtype == jnp.float32 and sent_logits.dtype == jnp.float32
    assert bool(jnp.all(jnp.isfinite(class_logits)))
    assert bool(jnp.all(jnp.isfinite(sent_logits)))
    print("KERNEL_OK")
</pallas_src>

<mosaic_0001>
module attributes {stable_mosaic.version = 11 : i64} {
  func.func @_fused_bert_kernel(%arg0: i32, %arg1: memref<16x32xf32, #tpu.memory_space<vmem>>, %arg2: memref<16x16xf32, #tpu.memory_space<vmem>>, %arg3: memref<1x32x96xbf16, #tpu.memory_space<vmem>>, %arg4: memref<1x32x32xbf16, #tpu.memory_space<vmem>>, %arg5: memref<1x32x64xbf16, #tpu.memory_space<vmem>>, %arg6: memref<1x64x32xbf16, #tpu.memory_space<vmem>>, %arg7: memref<1x8x128xf32, #tpu.memory_space<vmem>>, %arg8: memref<8x128xf32, #tpu.memory_space<vmem>>, %arg9: memref<32x32xbf16, #tpu.memory_space<vmem>>, %arg10: memref<32x4xbf16, #tpu.memory_space<vmem>>, %arg11: memref<2x4xf32, #tpu.memory_space<vmem>>, %arg12: memref<16x32xf32, #tpu.memory_space<vmem>>) attributes {dimension_semantics = [#tpu.dimension_semantics<arbitrary>], iteration_bounds = array<i64: 2>, scalar_prefetch = 0 : i64, scratch_operands = 1 : i64, tpu.core_type = #tpu.core_type<tc>, window_params = [{pipeline_mode = #tpu.pipeline_mode<synchronous>, transform_indices = @transform_0, window_bounds = array<i64: 16, 32>}, {pipeline_mode = #tpu.pipeline_mode<synchronous>, transform_indices = @transform_1, window_bounds = array<i64: 16, 16>}, {transform_indices = @transform_2, window_bounds = array<i64: 1, 32, 96>}, {transform_indices = @transform_3, window_bounds = array<i64: 1, 32, 32>}, {transform_indices = @transform_4, window_bounds = array<i64: 1, 32, 64>}, {transform_indices = @transform_5, window_bounds = array<i64: 1, 64, 32>}, {transform_indices = @transform_6, window_bounds = array<i64: 1, 8, 128>}, {pipeline_mode = #tpu.pipeline_mode<synchronous>, transform_indices = @transform_7, window_bounds = array<i64: 8, 128>}, {pipeline_mode = #tpu.pipeline_mode<synchronous>, transform_indices = @transform_8, window_bounds = array<i64: 32, 32>}, {pipeline_mode = #tpu.pipeline_mode<synchronous>, transform_indices = @transform_9, window_bounds = array<i64: 32, 4>}, {pipeline_mode = #tpu.pipeline_mode<synchronous>, transform_indices = @transform_10, window_bounds = array<i64: 2, 4>}]} {
    %c0 = arith.constant 0 : index
    %c0_0 = arith.constant 0 : index
    %c0_1 = arith.constant 0 : index
    %0 = vector.load %arg7[%c0, %c0_0, %c0_1] : memref<1x8x128xf32, #tpu.memory_space<vmem>>, vector<1x1x96xf32>
    %1 = vector.shape_cast %0 : vector<1x1x96xf32> to vector<1x96xf32>
    %c0_2 = arith.constant 0 : index
    %c1 = arith.constant 1 : index
    %c0_3 = arith.constant 0 : index
    %2 = vector.load %arg7[%c0_2, %c1, %c0_3] : memref<1x8x128xf32, #tpu.memory_space<vmem>>, vector<1x1x32xf32>
    %3 = vector.shape_cast %2 : vector<1x1x32xf32> to vector<1x32xf32>
    %c0_4 = arith.constant 0 : index
    %c2 = arith.constant 2 : index
    %c0_5 = arith.constant 0 : index
    %4 = vector.load %arg7[%c0_4, %c2, %c0_5] : memref<1x8x128xf32, #tpu.memory_space<vmem>>, vector<1x1x32xf32>
    %5 = vector.shape_cast %4 : vector<1x1x32xf32> to vector<1x32xf32>
    %c0_6 = arith.constant 0 : index
    %c3 = arith.constant 3 : index
    %c0_7 = arith.constant 0 : index
    %6 = vector.load %arg7[%c0_6, %c3, %c0_7] : memref<1x8x128xf32, #tpu.memory_space<vmem>>, vector<1x1x32xf32>
    %7 = vector.shape_cast %6 : vector<1x1x32xf32> to vector<1x32xf32>
    %c0_8 = arith.constant 0 : index
    %c4 = arith.constant 4 : index
    %c0_9 = arith.constant 0 : index
    %8 = vector.load %arg7[%c0_8, %c4, %c0_9] : memref<1x8x128xf32, #tpu.memory_space<vmem>>, vector<1x1x64xf32>
    %9 = vector.shape_cast %8 : vector<1x1x64xf32> to vector<1x64xf32>
    %c0_10 = arith.constant 0 : index
    %c5 = arith.constant 5 : index
    %c0_11 = arith.constant 0 : index
    %10 = vector.load %arg7[%c0_10, %c5, %c0_11] : memref<1x8x128xf32, #tpu.memory_space<vmem>>, vector<1x1x32xf32>
    %11 = vector.shape_cast %10 : vector<1x1x32xf32> to vector<1x32xf32>
    %c0_12 = arith.constant 0 : index
    %c6 = arith.constant 6 : index
    %c0_13 = arith.constant 0 : index
    %12 = vector.load %arg7[%c0_12, %c6, %c0_13] : memref<1x8x128xf32, #tpu.memory_space<vmem>>, vector<1x1x32xf32>
    %13 = vector.shape_cast %12 : vector<1x1x32xf32> to vector<1x32xf32>
    %c0_14 = arith.constant 0 : index
    %c7 = arith.constant 7 : index
    %c0_15 = arith.constant 0 : index
    %14 = vector.load %arg7[%c0_14, %c7, %c0_15] : memref<1x8x128xf32, #tpu.memory_space<vmem>>, vector<1x1x32xf32>
    %15 = vector.shape_cast %14 : vector<1x1x32xf32> to vector<1x32xf32>
    %c0_i32 = arith.constant 0 : i32
    %16 = arith.cmpi eq, %arg0, %c0_i32 : i32
    %17 = arith.extui %16 : i1 to i32
    %c0_i32_16 = arith.constant 0 : i32
    %18 = arith.cmpi ne, %17, %c0_i32_16 : i32
    scf.if %18 {
      %c0_69 = arith.constant 0 : index
      %c0_70 = arith.constant 0 : index
      %184 = vector.load %arg1[%c0_69, %c0_70] : memref<16x32xf32, #tpu.memory_space<vmem>>, vector<16x32xf32>
      %c0_71 = arith.constant 0 : index
      %c0_72 = arith.constant 0 : index
      %185 = vector.load %arg8[%c0_71, %c0_72] : memref<8x128xf32, #tpu.memory_space<vmem>>, vector<1x32xf32>
      %c1_73 = arith.constant 1 : index
      %c0_74 = arith.constant 0 : index
      %186 = vector.load %arg8[%c1_73, %c0_74] : memref<8x128xf32, #tpu.memory_space<vmem>>, vector<1x32xf32>
      %cst_75 = arith.constant dense<0.000000e+00> : vector<16xf32>
      %187 = vector.multi_reduction <add>, %184, %cst_75 [1] : vector<16x32xf32> to vector<16xf32>
      %188 = vector.shape_cast %187 : vector<16xf32> to vector<16x1xf32>
      %cst_76 = arith.constant 3.200000e+01 : f32
      %189 = vector.broadcast %cst_76 : f32 to vector<16x1xf32>
      %190 = arith.divf %188, %189 : vector<16x1xf32>
      %191 = vector.broadcast %190 : vector<16x1xf32> to vector<16x32xf32>
      %192 = arith.subf %184, %191 : vector<16x32xf32>
      %193 = arith.mulf %192, %192 : vector<16x32xf32>
      %cst_77 = arith.constant dense<0.000000e+00> : vector<16xf32>
      %194 = vector.multi_reduction <add>, %193, %cst_77 [1] : vector<16x32xf32> to vector<16xf32>
      %195 = vector.shape_cast %194 : vector<16xf32> to vector<16x1xf32>
      %cst_78 = arith.constant 3.200000e+01 : f32
      %196 = vector.broadcast %cst_78 : f32 to vector<16x1xf32>
      %197 = arith.divf %195, %196 : vector<16x1xf32>
      %198 = vector.broadcast %190 : vector<16x1xf32> to vector<16x32xf32>
      %199 = arith.subf %184, %198 : vector<16x32xf32>
      %cst_79 = arith.constant 9.99999996E-13 : f32
      %200 = vector.broadcast %cst_79 : f32 to vector<16x1xf32>
      %201 = arith.addf %197, %200 : vector<16x1xf32>
      %202 = math.rsqrt %201 : vector<16x1xf32>
      %203 = vector.broadcast %202 : vector<16x1xf32> to vector<16x32xf32>
      %204 = arith.mulf %199, %203 : vector<16x32xf32>
      %205 = vector.broadcast %185 : vector<1x32xf32> to vector<16x32xf32>
      %206 = arith.mulf %204, %205 : vector<16x32xf32>
      %207 = vector.broadcast %186 : vector<1x32xf32> to vector<16x32xf32>
      %208 = arith.addf %206, %207 : vector<16x32xf32>
      %c0_80 = arith.constant 0 : index
      %c0_81 = arith.constant 0 : index
      %209 = vector.load %arg12[%c0_80, %c0_81] : memref<16x32xf32, #tpu.memory_space<vmem>>, vector<16x32xf32>
      tpu.vector_store %arg12[%c0_80, %c0_81], %208 {strides = array<i32>} : memref<16x32xf32, #tpu.memory_space<vmem>>, vector<16x32xf32>,
    } else {
    }
    %c0_17 = arith.constant 0 : index
    %c0_18 = arith.constant 0 : index
    %19 = vector.load %arg12[%c0_17, %c0_18] : memref<16x32xf32, #tpu.memory_space<vmem>>, vector<16x32xf32>
    %20 = arith.truncf %19 : vector<16x32xf32> to vector<16x32xbf16>
    %c0_19 = arith.constant 0 : index
    %c0_20 = arith.constant 0 : index
    %c0_21 = arith.constant 0 : index
    %21 = vector.load %arg3[%c0_19, %c0_20, %c0_21] : memref<1x32x96xbf16, #tpu.memory_space<vmem>>, vector<1x32x96xbf16>
    %22 = vector.shape_cast %21 : vector<1x32x96xbf16> to vector<32x96xbf16>
    %cst = arith.constant dense<0.000000e+00> : vector<16x96xf32>
    %23 = tpu.matmul %20, %22, %cst {dimension_numbers = #tpu.dot_dimension_numbers<[1], [0], [0], [1], [0, 0, 1, 1], [], []>} : vector<16x32xbf16>, vector<32x96xbf16>, vector<16x96xf32> -> vector<16x96xf32>
    %24 = vector.broadcast %1 : vector<1x96xf32> to vector<16x96xf32>
    %25 = arith.addf %23, %24 : vector<16x96xf32>
    %26 = arith.truncf %25 : vector<16x96xf32> to vector<16x96xbf16>
    %27 = vector.extract_strided_slice %25 {offsets = [0, 32], sizes = [16, 32], strides = [1, 1]} : vector<16x96xf32> to vector<16x32xf32>
    %28 = tpu.transpose %27, [1, 0] : vector<16x32xf32> -> vector<32x16xf32>
    %c0_22 = arith.constant 0 : index
    %c0_23 = arith.constant 0 : index
    %29 = vector.load %arg2[%c0_22, %c0_23] : memref<16x16xf32, #tpu.memory_space<vmem>>, vector<16x16xf32>
    %30 = vector.extract_strided_slice %26 {offsets = [0, 0], sizes = [16, 8], strides = [1, 1]} : vector<16x96xbf16> to vector<16x8xbf16>
    %31 = vector.extract_strided_slice %28 {offsets = [0, 0], sizes = [8, 16], strides = [1, 1]} : vector<32x16xf32> to vector<8x16xf32>
    %32 = arith.truncf %31 : vector<8x16xf32> to vector<8x16xbf16>
    %33 = vector.extract_strided_slice %26 {offsets = [0, 64], sizes = [16, 8], strides = [1, 1]} : vector<16x96xbf16> to vector<16x8xbf16>
    %cst_24 = arith.constant dense<0.000000e+00> : vector<16x16xf32>
    %34 = tpu.matmul %30, %32, %cst_24 {dimension_numbers = #tpu.dot_dimension_numbers<[1], [0], [0], [1], [0, 0, 1, 1], [], []>} : vector<16x8xbf16>, vector<8x16xbf16>, vector<16x16xf32> -> vector<16x16xf32>
    %35 = arith.addf %34, %29 : vector<16x16xf32>
    %cst_25 = arith.constant dense<0xFF800000> : vector<16xf32>
    %36 = vector.multi_reduction <maximumf>, %35, %cst_25 [1] : vector<16x16xf32> to vector<16xf32>
    %37 = vector.shape_cast %36 : vector<16xf32> to vector<16x1xf32>
    %38 = vector.broadcast %37 : vector<16x1xf32> to vector<16x16xf32>
    %39 = arith.subf %35, %38 : vector<16x16xf32>
    %40 = math.exp %39 : vector<16x16xf32>
    %cst_26 = arith.constant dense<0.000000e+00> : vector<16xf32>
    %41 = vector.multi_reduction <add>, %40, %cst_26 [1] : vector<16x16xf32> to vector<16xf32>
    %42 = vector.shape_cast %41 : vector<16xf32> to vector<16x1xf32>
    %43 = tpu.reciprocal %42 {approx = true} : vector<16x1xf32> -> vector<16x1xf32>
    %44 = vector.broadcast %43 : vector<16x1xf32> to vector<16x16xf32>
    %45 = arith.mulf %40, %44 : vector<16x16xf32>
    %46 = arith.truncf %45 : vector<16x16xf32> to vector<16x16xbf16>
    %cst_27 = arith.constant dense<0.000000e+00> : vector<16x8xf32>
    %47 = tpu.matmul %46, %33, %cst_27 {dimension_numbers = #tpu.dot_dimension_numbers<[1], [0], [0], [1], [0, 0, 1, 1], [], []>} : vector<16x16xbf16>, vector<16x8xbf16>, vector<16x8xf32> -> vector<16x8xf32>
    %48 = vector.extract_strided_slice %26 {offsets = [0, 8], sizes = [16, 8], strides = [1, 1]} : vector<16x96xbf16> to vector<16x8xbf16>
    %49 = vector.extract_strided_slice %28 {offsets = [8, 0], sizes = [8, 16], strides = [1, 1]} : vector<32x16xf32> to vector<8x16xf32>
    %50 = arith.truncf %49 : vector<8x16xf32> to vector<8x16xbf16>
    %51 = vector.extract_strided_slice %26 {offsets = [0, 72], sizes = [16, 8], strides = [1, 1]} : vector<16x96xbf16> to vector<16x8xbf16>
    %cst_28 = arith.constant dense<0.000000e+00> : vector<16x16xf32>
    %52 = tpu.matmul %48, %50, %cst_28 {dimension_numbers = #tpu.dot_dimension_numbers<[1], [0], [0], [1], [0, 0, 1, 1], [], []>} : vector<16x8xbf16>, vector<8x16xbf16>, vector<16x16xf32> -> vector<16x16xf32>
    %53 = arith.addf %52, %29 : vector<16x16xf32>
    %cst_29 = arith.constant dense<0xFF800000> : vector<16xf32>
    %54 = vector.multi_reduction <maximumf>, %53, %cst_29 [1] : vector<16x16xf32> to vector<16xf32>
    %55 = vector.shape_cast %54 : vector<16xf32> to vector<16x1xf32>
    %56 = vector.broadcast %55 : vector<16x1xf32> to vector<16x16xf32>
    %57 = arith.subf %53, %56 : vector<16x16xf32>
    %58 = math.exp %57 : vector<16x16xf32>
    %cst_30 = arith.constant dense<0.000000e+00> : vector<16xf32>
    %59 = vector.multi_reduction <add>, %58, %cst_30 [1] : vector<16x16xf32> to vector<16xf32>
    %60 = vector.shape_cast %59 : vector<16xf32> to vector<16x1xf32>
    %61 = tpu.reciprocal %60 {approx = true} : vector<16x1xf32> -> vector<16x1xf32>
    %62 = vector.broadcast %61 : vector<16x1xf32> to vector<16x16xf32>
    %63 = arith.mulf %58, %62 : vector<16x16xf32>
    %64 = arith.truncf %63 : vector<16x16xf32> to vector<16x16xbf16>
    %cst_31 = arith.constant dense<0.000000e+00> : vector<16x8xf32>
    %65 = tpu.matmul %64, %51, %cst_31 {dimension_numbers = #tpu.dot_dimension_numbers<[1], [0], [0], [1], [0, 0, 1, 1], [], []>} : vector<16x16xbf16>, vector<16x8xbf16>, vector<16x8xf32> -> vector<16x8xf32>
    %66 = vector.extract_strided_slice %26 {offsets = [0, 16], sizes = [16, 8], strides = [1, 1]} : vector<16x96xbf16> to vector<16x8xbf16>
    %67 = vector.extract_strided_slice %28 {offsets = [16, 0], sizes = [8, 16], strides = [1, 1]} : vector<32x16xf32> to vector<8x16xf32>
    %68 = arith.truncf %67 : vector<8x16xf32> to vector<8x16xbf16>
    %69 = vector.extract_strided_slice %26 {offsets = [0, 80], sizes = [16, 8], strides = [1, 1]} : vector<16x96xbf16> to vector<16x8xbf16>
    %cst_32 = arith.constant dense<0.000000e+00> : vector<16x16xf32>
    %70 = tpu.matmul %66, %68, %cst_32 {dimension_numbers = #tpu.dot_dimension_numbers<[1], [0], [0], [1], [0, 0, 1, 1], [], []>} : vector<16x8xbf16>, vector<8x16xbf16>, vector<16x16xf32> -> vector<16x16xf32>
    %71 = arith.addf %70, %29 : vector<16x16xf32>
    %cst_33 = arith.constant dense<0xFF800000> : vector<16xf32>
    %72 = vector.multi_reduction <maximumf>, %71, %cst_33 [1] : vector<16x16xf32> to vector<16xf32>
    %73 = vector.shape_cast %72 : vector<16xf32> to vector<16x1xf32>
    %74 = vector.broadcast %73 : vector<16x1xf32> to vector<16x16xf32>
    %75 = arith.subf %71, %74 : vector<16x16xf32>
    %76 = math.exp %75 : vector<16x16xf32>
    %cst_34 = arith.constant dense<0.000000e+00> : vector<16xf32>
    %77 = vector.multi_reduction <add>, %76, %cst_34 [1] : vector<16x16xf32> to vector<16xf32>
    %78 = vector.shape_cast %77 : vector<16xf32> to vector<16x1xf32>
    %79 = tpu.reciprocal %78 {approx = true} : vector<16x1xf32> -> vector<16x1xf32>
    %80 = vector.broadcast %79 : vector<16x1xf32> to vector<16x16xf32>
    %81 = arith.mulf %76, %80 : vector<16x16xf32>
    %82 = arith.truncf %81 : vector<16x16xf32> to vector<16x16xbf16>
    %cst_35 = arith.constant dense<0.000000e+00> : vector<16x8xf32>
    %83 = tpu.matmul %82, %69, %cst_35 {dimension_numbers = #tpu.dot_dimension_numbers<[1], [0], [0], [1], [0, 0, 1, 1], [], []>} : vector<16x16xbf16>, vector<16x8xbf16>, vector<16x8xf32> -> vector<16x8xf32>
    %84 = vector.extract_strided_slice %26 {offsets = [0, 24], sizes = [16, 8], strides = [1, 1]} : vector<16x96xbf16> to vector<16x8xbf16>
    %85 = vector.extract_strided_slice %28 {offsets = [24, 0], sizes = [8, 16], strides = [1, 1]} : vector<32x16xf32> to vector<8x16xf32>
    %86 = arith.truncf %85 : vector<8x16xf32> to vector<8x16xbf16>
    %87 = vector.extract_strided_slice %26 {offsets = [0, 88], sizes = [16, 8], strides = [1, 1]} : vector<16x96xbf16> to vector<16x8xbf16>
    %cst_36 = arith.constant dense<0.000000e+00> : vector<16x16xf32>
    %88 = tpu.matmul %84, %86, %cst_36 {dimension_numbers = #tpu.dot_dimension_numbers<[1], [0], [0], [1], [0, 0, 1, 1], [], []>} : vector<16x8xbf16>, vector<8x16xbf16>, vector<16x16xf32> -> vector<16x16xf32>
    %89 = arith.addf %88, %29 : vector<16x16xf32>
    %cst_37 = arith.constant dense<0xFF800000> : vector<16xf32>
    %90 = vector.multi_reduction <maximumf>, %89, %cst_37 [1] : vector<16x16xf32> to vector<16xf32>
    %91 = vector.shape_cast %90 : vector<16xf32> to vector<16x1xf32>
    %92 = vector.broadcast %91 : vector<16x1xf32> to vector<16x16xf32>
    %93 = arith.subf %89, %92 : vector<16x16xf32>
    %94 = math.exp %93 : vector<16x16xf32>
    %cst_38 = arith.constant dense<0.000000e+00> : vector<16xf32>
    %95 = vector.multi_reduction <add>, %94, %cst_38 [1] : vector<16x16xf32> to vector<16xf32>
    %96 = vector.shape_cast %95 : vector<16xf32> to vector<16x1xf32>
    %97 = tpu.reciprocal %96 {approx = true} : vector<16x1xf32> -> vector<16x1xf32>
    %98 = vector.broadcast %97 : vector<16x1xf32> to vector<16x16xf32>
    %99 = arith.mulf %94, %98 : vector<16x16xf32>
    %100 = arith.truncf %99 : vector<16x16xf32> to vector<16x16xbf16>
    %cst_39 = arith.constant dense<0.000000e+00> : vector<16x8xf32>
    %101 = tpu.matmul %100, %87, %cst_39 {dimension_numbers = #tpu.dot_dimension_numbers<[1], [0], [0], [1], [0, 0, 1, 1], [], []>} : vector<16x16xbf16>, vector<16x8xbf16>, vector<16x8xf32> -> vector<16x8xf32>
    %102 = tpu.concatenate %47, %65, %83, %101 in 1 : vector<16x8xf32>, vector<16x8xf32>, vector<16x8xf32>, vector<16x8xf32> -> vector<16x32xf32>
    %103 = arith.truncf %102 : vector<16x32xf32> to vector<16x32xbf16>
    %c0_40 = arith.constant 0 : index
    %c0_41 = arith.constant 0 : index
    %c0_42 = arith.constant 0 : index
    %104 = vector.load %arg4[%c0_40, %c0_41, %c0_42] : memref<1x32x32xbf16, #tpu.memory_space<vmem>>, vector<1x32x32xbf16>
    %105 = vector.shape_cast %104 : vector<1x32x32xbf16> to vector<32x32xbf16>
    %cst_43 = arith.constant dense<0.000000e+00> : vector<16x32xf32>
    %106 = tpu.matmul %103, %105, %cst_43 {dimension_numbers = #tpu.dot_dimension_numbers<[1], [0], [0], [1], [0, 0, 1, 1], [], []>} : vector<16x32xbf16>, vector<32x32xbf16>, vector<16x32xf32> -> vector<16x32xf32>
    %107 = vector.broadcast %3 : vector<1x32xf32> to vector<16x32xf32>
    %108 = arith.addf %106, %107 : vector<16x32xf32>
    %109 = arith.addf %108, %19 : vector<16x32xf32>
    %cst_44 = arith.constant dense<0.000000e+00> : vector<16xf32>
    %110 = vector.multi_reduction <add>, %109, %cst_44 [1] : vector<16x32xf32> to vector<16xf32>
    %111 = vector.shape_cast %110 : vector<16xf32> to vector<16x1xf32>
    %cst_45 = arith.constant 3.200000e+01 : f32
    %112 = vector.broadcast %cst_45 : f32 to vector<16x1xf32>
    %113 = arith.divf %111, %112 : vector<16x1xf32>
    %114 = vector.broadcast %113 : vector<16x1xf32> to vector<16x32xf32>
    %115 = arith.subf %109, %114 : vector<16x32xf32>
    %116 = arith.mulf %115, %115 : vector<16x32xf32>
    %cst_46 = arith.constant dense<0.000000e+00> : vector<16xf32>
    %117 = vector.multi_reduction <add>, %116, %cst_46 [1] : vector<16x32xf32> to vector<16xf32>
    %118 = vector.shape_cast %117 : vector<16xf32> to vector<16x1xf32>
    %cst_47 = arith.constant 3.200000e+01 : f32
    %119 = vector.broadcast %cst_47 : f32 to vector<16x1xf32>
    %120 = arith.divf %118, %119 : vector<16x1xf32>
    %121 = vector.broadcast %113 : vector<16x1xf32> to vector<16x32xf32>
    %122 = arith.subf %109, %121 : vector<16x32xf32>
    %cst_48 = arith.constant 9.99999996E-13 : f32
    %123 = vector.broadcast %cst_48 : f32 to vector<16x1xf32>
    %124 = arith.addf %120, %123 : vector<16x1xf32>
    %125 = math.rsqrt %124 : vector<16x1xf32>
    %126 = vector.broadcast %125 : vector<16x1xf32> to vector<16x32xf32>
    %127 = arith.mulf %122, %126 : vector<16x32xf32>
    %128 = vector.broadcast %5 : vector<1x32xf32> to vector<16x32xf32>
    %129 = arith.mulf %127, %128 : vector<16x32xf32>
    %130 = vector.broadcast %7 : vector<1x32xf32> to vector<16x32xf32>
    %131 = arith.addf %129, %130 : vector<16x32xf32>
    %132 = arith.truncf %131 : vector<16x32xf32> to vector<16x32xbf16>
    %c0_49 = arith.constant 0 : index
    %c0_50 = arith.constant 0 : index
    %c0_51 = arith.constant 0 : index
    %133 = vector.load %arg5[%c0_49, %c0_50, %c0_51] : memref<1x32x64xbf16, #tpu.memory_space<vmem>>, vector<1x32x64xbf16>
    %134 = vector.shape_cast %133 : vector<1x32x64xbf16> to vector<32x64xbf16>
    %cst_52 = arith.constant dense<0.000000e+00> : vector<16x64xf32>
    %135 = tpu.matmul %132, %134, %cst_52 {dimension_numbers = #tpu.dot_dimension_numbers<[1], [0], [0], [1], [0, 0, 1, 1], [], []>} : vector<16x32xbf16>, vector<32x64xbf16>, vector<16x64xf32> -> vector<16x64xf32>
    %136 = vector.broadcast %9 : vector<1x64xf32> to vector<16x64xf32>
    %137 = arith.addf %135, %136 : vector<16x64xf32>
    %138 = arith.mulf %137, %137 : vector<16x64xf32>
    %139 = arith.mulf %137, %138 : vector<16x64xf32>
    %cst_53 = arith.constant 4.471500e-02 : f32
    %140 = vector.broadcast %cst_53 : f32 to vector<16x64xf32>
    %141 = arith.mulf %140, %139 : vector<16x64xf32>
    %142 = arith.addf %137, %141 : vector<16x64xf32>
    %cst_54 = arith.constant 0.797884583 : f32
    %143 = vector.broadcast %cst_54 : f32 to vector<16x64xf32>
    %144 = arith.mulf %143, %142 : vector<16x64xf32>
    %145 = math.tanh %144 : vector<16x64xf32>
    %cst_55 = arith.constant 1.000000e+00 : f32
    %146 = vector.broadcast %cst_55 : f32 to vector<16x64xf32>
    %147 = arith.addf %146, %145 : vector<16x64xf32>
    %cst_56 = arith.constant 5.000000e-01 : f32
    %148 = vector.broadcast %cst_56 : f32 to vector<16x64xf32>
    %149 = arith.mulf %148, %147 : vector<16x64xf32>
    %150 = arith.mulf %137, %149 : vector<16x64xf32>
    %151 = arith.truncf %150 : vector<16x64xf32> to vector<16x64xbf16>
    %c0_57 = arith.constant 0 : index
    %c0_58 = arith.constant 0 : index
    %c0_59 = arith.constant 0 : index
    %152 = vector.load %arg6[%c0_57, %c0_58, %c0_59] : memref<1x64x32xbf16, #tpu.memory_space<vmem>>, vector<1x64x32xbf16>
    %153 = vector.shape_cast %152 : vector<1x64x32xbf16> to vector<64x32xbf16>
    %cst_60 = arith.constant dense<0.000000e+00> : vector<16x32xf32>
    %154 = tpu.matmul %151, %153, %cst_60 {dimension_numbers = #tpu.dot_dimension_numbers<[1], [0], [0], [1], [0, 0, 1, 1], [], []>} : vector<16x64xbf16>, vector<64x32xbf16>, vector<16x32xf32> -> vector<16x32xf32>
    %155 = vector.broadcast %11 : vector<1x32xf32> to vector<16x32xf32>
    %156 = arith.addf %154, %155 : vector<16x32xf32>
    %157 = arith.addf %156, %131 : vector<16x32xf32>
    %cst_61 = arith.constant dense<0.000000e+00> : vector<16xf32>
    %158 = vector.multi_reduction <add>, %157, %cst_61 [1] : vector<16x32xf32> to vector<16xf32>
    %159 = vector.shape_cast %158 : vector<16xf32> to vector<16x1xf32>
    %cst_62 = arith.constant 3.200000e+01 : f32
    %160 = vector.broadcast %cst_62 : f32 to vector<16x1xf32>
    %161 = arith.divf %159, %160 : vector<16x1xf32>
    %162 = vector.broadcast %161 : vector<16x1xf32> to vector<16x32xf32>
    %163 = arith.subf %157, %162 : vector<16x32xf32>
    %164 = arith.mulf %163, %163 : vector<16x32xf32>
    %cst_63 = arith.constant dense<0.000000e+00> : vector<16xf32>
    %165 = vector.multi_reduction <add>, %164, %cst_63 [1] : vector<16x32xf32> to vector<16xf32>
    %166 = vector.shape_cast %165 : vector<16xf32> to vector<16x1xf32>
    %cst_64 = arith.constant 3.200000e+01 : f32
    %167 = vector.broadcast %cst_64 : f32 to vector<16x1xf32>
    %168 = arith.divf %166, %167 : vector<16x1xf32>
    %169 = vector.broadcast %161 : vector<16x1xf32> to vector<16x32xf32>
    %170 = arith.subf %157, %169 : vector<16x32xf32>
    %cst_65 = arith.constant 9.99999996E-13 : f32
    %171 = vector.broadcast %cst_65 : f32 to vector<16x1xf32>
    %172 = arith.addf %168, %171 : vector<16x1xf32>
    %173 = math.rsqrt %172 : vector<16x1xf32>
    %174 = vector.broadcast %173 : vector<16x1xf32> to vector<16x32xf32>
    %175 = arith.mulf %170, %174 : vector<16x32xf32>
    %176 = vector.broadcast %13 : vector<1x32xf32> to vector<16x32xf32>
    %177 = arith.mulf %175, %176 : vector<16x32xf32>
    %178 = vector.broadcast %15 : vector<1x32xf32> to vector<16x32xf32>
    %179 = arith.addf %177, %178 : vector<16x32xf32>
    %c0_66 = arith.constant 0 : index
    %c0_67 = arith.constant 0 : index
    %180 = vector.load %arg12[%c0_66, %c0_67] : memref<16x32xf32, #tpu.memory_space<vmem>>, vector<16x32xf32>
    tpu.vector_store %arg12[%c0_66, %c0_67], %179 {strides = array<i32>} : memref<16x32xf32, #tpu.memory_space<vmem>>, vector<16x32xf32>,
    %c1_i32 = arith.constant 1 : i32
    %181 = arith.cmpi eq, %arg0, %c1_i32 : i32
    %182 = arith.extui %181 : i1 to i32
    %c0_i32_68 = arith.constant 0 : i32
    %183 = arith.cmpi ne, %182, %c0_i32_68 : i32
    scf.if %183 {
      %c2_69 = arith.constant 2 : index
      %c0_70 = arith.constant 0 : index
      %184 = vector.load %arg8[%c2_69, %c0_70] : memref<8x128xf32, #tpu.memory_space<vmem>>, vector<1x32xf32>
      %c3_71 = arith.constant 3 : index
      %c0_72 = arith.constant 0 : index
      %185 = vector.load %arg8[%c3_71, %c0_72] : memref<8x128xf32, #tpu.memory_space<vmem>>, vector<1x4xf32>
      %c0_73 = arith.constant 0 : index
      %c0_74 = arith.constant 0 : index
      %186 = vector.load %arg12[%c0_73, %c0_74] : memref<16x32xf32, #tpu.memory_space<vmem>>, vector<1x32xf32>
      %c8 = arith.constant 8 : index
      %c0_75 = arith.constant 0 : index
      %187 = vector.load %arg12[%c8, %c0_75] : memref<16x32xf32, #tpu.memory_space<vmem>>, vector<1x32xf32>
      %188 = tpu.concatenate %186, %187 in 0 : vector<1x32xf32>, vector<1x32xf32> -> vector<2x32xf32>
      %189 = arith.truncf %188 : vector<2x32xf32> to vector<2x32xbf16>
      %c0_76 = arith.constant 0 : index
      %c0_77 = arith.constant 0 : index
      %190 = vector.load %arg9[%c0_76, %c0_77] : memref<32x32xbf16, #tpu.memory_space<vmem>>, vector<32x32xbf16>
      %cst_78 = arith.constant dense<0.000000e+00> : vector<2x32xf32>
      %191 = tpu.matmul %189, %190, %cst_78 {dimension_numbers = #tpu.dot_dimension_numbers<[1], [0], [0], [1], [0, 0, 1, 1], [], []>} : vector<2x32xbf16>, vector<32x32xbf16>, vector<2x32xf32> -> vector<2x32xf32>
      %192 = vector.broadcast %184 : vector<1x32xf32> to vector<2x32xf32>
      %193 = arith.addf %191, %192 : vector<2x32xf32>
      %194 = math.tanh %193 : vector<2x32xf32>
      %195 = arith.truncf %194 : vector<2x32xf32> to vector<2x32xbf16>
      %c0_79 = arith.constant 0 : index
      %c0_80 = arith.constant 0 : index
      %196 = vector.load %arg10[%c0_79, %c0_80] : memref<32x4xbf16, #tpu.memory_space<vmem>>, vector<32x4xbf16>
      %cst_81 = arith.constant dense<0.000000e+00> : vector<2x4xf32>
      %197 = tpu.matmul %195, %196, %cst_81 {dimension_numbers = #tpu.dot_dimension_numbers<[1], [0], [0], [1], [0, 0, 1, 1], [], []>} : vector<2x32xbf16>, vector<32x4xbf16>, vector<2x4xf32> -> vector<2x4xf32>
      %198 = vector.broadcast %185 : vector<1x4xf32> to vector<2x4xf32>
      %199 = arith.addf %197, %198 : vector<2x4xf32>
      %c0_82 = arith.constant 0 : index
      %c0_83 = arith.constant 0 : index
      %200 = vector.load %arg11[%c0_82, %c0_83] : memref<2x4xf32, #tpu.memory_space<vmem>>, vector<2x4xf32>
      tpu.vector_store %arg11[%c0_82, %c0_83], %199 {strides = array<i32>} : memref<2x4xf32, #tpu.memory_space<vmem>>, vector<2x4xf32>,
    } else {
    }
    return
  }
  func.func @transform_0(%arg0: i32) -> (i32, i32) {
    %c0_i32 = arith.constant 0 : i32
    %c0_i32_0 = arith.constant 0 : i32
    %c0_i32_1 = arith.constant 0 : i32
    return %c0_i32, %c0_i32_0 : i32, i32
  }
  func.func @transform_1(%arg0: i32) -> (i32, i32) {
    %c0_i32 = arith.constant 0 : i32
    %c0_i32_0 = arith.constant 0 : i32
    %c0_i32_1 = arith.constant 0 : i32
    return %c0_i32, %c0_i32_0 : i32, i32
  }
  func.func @transform_2(%arg0: i32) -> (i32, i32, i32) {
    %c0_i32 = arith.constant 0 : i32
    %c0_i32_0 = arith.constant 0 : i32
    %c0_i32_1 = arith.constant 0 : i32
    return %arg0, %c0_i32, %c0_i32_0 : i32, i32, i32
  }
  func.func @transform_3(%arg0: i32) -> (i32, i32, i32) {
    %c0_i32 = arith.constant 0 : i32
    %c0_i32_0 = arith.constant 0 : i32
    %c0_i32_1 = arith.constant 0 : i32
    return %arg0, %c0_i32, %c0_i32_0 : i32, i32, i32
  }
  func.func @transform_4(%arg0: i32) -> (i32, i32, i32) {
    %c0_i32 = arith.constant 0 : i32
    %c0_i32_0 = arith.constant 0 : i32
    %c0_i32_1 = arith.constant 0 : i32
    return %arg0, %c0_i32, %c0_i32_0 : i32, i32, i32
  }
  func.func @transform_5(%arg0: i32) -> (i32, i32, i32) {
    %c0_i32 = arith.constant 0 : i32
    %c0_i32_0 = arith.constant 0 : i32
    %c0_i32_1 = arith.constant 0 : i32
    return %arg0, %c0_i32, %c0_i32_0 : i32, i32, i32
  }
  func.func @transform_6(%arg0: i32) -> (i32, i32, i32) {
    %c0_i32 = arith.constant 0 : i32
    %c0_i32_0 = arith.constant 0 : i32
    %c0_i32_1 = arith.constant 0 : i32
    return %arg0, %c0_i32, %c0_i32_0 : i32, i32, i32
  }
  func.func @transform_7(%arg0: i32) -> (i32, i32) {
    %c0_i32 = arith.constant 0 : i32
    %c0_i32_0 = arith.constant 0 : i32
    %c0_i32_1 = arith.constant 0 : i32
    return %c0_i32, %c0_i32_0 : i32, i32
  }
  func.func @transform_8(%arg0: i32) -> (i32, i32) {
    %c0_i32 = arith.constant 0 : i32
    %c0_i32_0 = arith.constant 0 : i32
    %c0_i32_1 = arith.constant 0 : i32
    return %c0_i32, %c0_i32_0 : i32, i32
  }
  func.func @transform_9(%arg0: i32) -> (i32, i32) {
    %c0_i32 = arith.constant 0 : i32
    %c0_i32_0 = arith.constant 0 : i32
    %c0_i32_1 = arith.constant 0 : i32
    return %c0_i32, %c0_i32_0 : i32, i32
  }
  func.func @transform_10(%arg0: i32) -> (i32, i32) {
    %c0_i32 = arith.constant 0 : i32
    %c0_i32_0 = arith.constant 0 : i32
    %c0_i32_1 = arith.constant 0 : i32
    return %c0_i32, %c0_i32_0 : i32, i32
  }
}

</mosaic_0001>

<bundles_post_ra>
// kernel: multi_task_bert_forward.1
= control target key start
LH: loop header
LB: loop body
LE: loop exit
PB: predicated region body
PF: predicated region fallthrough
CT: control target
= control target key end

     0   :  { %s1571_s13 = smov 0   ;;  %s1783_s0 = inlined_call_operand.vmem [shape: f32[16,32], index: 0, kind: input, shape index: {}]   ;;  %s1784_s1 = inlined_call_operand.vmem [shape: f32[16,16], index: 1, kind: input, shape index: {}]   ;;  %s1785_s2 = inlined_call_operand.vmem [shape: bf16[2,32,96], index: 2, kind: input, shape index: {}]   ;;  %s1786_s3 = inlined_call_operand.vmem [shape: bf16[2,32,32], index: 3, kind: input, shape index: {}]   ;;  %s1787_s4 = inlined_call_operand.vmem [shape: bf16[2,32,64], index: 4, kind: input, shape index: {}]   ;;  %s1788_s5 = inlined_call_operand.vmem [shape: bf16[2,64,32], index: 5, kind: input, shape index: {}]   ;;  %s1789_s6 = inlined_call_operand.vmem [shape: f32[2,8,128], index: 6, kind: input, shape index: {}]   ;;  %s1790_s7 = inlined_call_operand.vmem [shape: f32[8,128], index: 7, kind: input, shape index: {}]   ;;  %s1791_s8 = inlined_call_operand.vmem [shape: bf16[32,32], index: 8, kind: input, shape index: {}]   ;;  %s1792_s9 = inlined_call_operand.vmem [shape: bf16[32,4], index: 9, kind: input, shape index: {}]   ;;  %s1793_s10 = inlined_call_operand.vmem [shape: f32[2,4], index: 10, kind: output, shape index: {}]  }
   0x1 LB: > { %s1577_s14 = sadd.s32 4294967295, %s1501_s13   ;;  %p1298_p0 = scmp.ge.s32.totalorder %s1501_s13, 1  ;;  %s1501_s13 = sphi %s1571_s13, %s20_s13  }
   0x2   : > { %p346_p1 = scmp.lt.s32.totalorder %s1501_s13, 3 }
   0x4   : > { %p347_p2 = pnand %p1298_p0, %p346_p1 }
   0x5   : > { %p398_p3 = scmp.lt.s32.totalorder (!%p347_p2), %s1577_s14, 1  ;;  %p1308_p4 = scmp.ne.s32.totalorder (!%p347_p2), %s1577_s14, 0 }
   0x6   : > { %350 = sbr.rel (%p347_p2) target bundleno = 3062 (0xbf6), region = 60 }
   0xb   : > { %s399_s15 = scalar_select %p398_p3, %s1577_s14, 1 }
   0xd   : > { %s1382_s16 = sshll.u32 %s399_s15, 4  ;;  %s1385_s17 = sshll.u32 %s399_s15, 5 }
   0xe   : > { %s1586_s20 = scalar_lea.vmem %s1785_s2, %s1382_s16  ;;  %s1591_s23 = scalar_lea.vmem %s1786_s3, %s1382_s16 }
   0xf   : > { %s1596_s26 = scalar_lea.vmem %s1787_s4, %s1382_s16  ;;  %s1601_s29 = scalar_lea.vmem %s1788_s5, %s1385_s17 }
  0x10   : > { %s1307_s30 = sshll.u32 %s399_s15, 3  ;;  %434 = sbr.rel (%p1308_p4) target bundleno = 299 (0x12b), region = 64 }
  0x11   : > { %s421_s18 = scalar_lea.vmem %s1789_s6, %s1307_s30 }
  0x12   : > { %v1606_v0 = vld [vmem:[%s421_s18] sm:$0x1]  ;;  %v1608_v1 = vld [vmem:[%s421_s18 + $0x1] sm:$0x1]  ;;  %v1610_v2 = vld [vmem:[%s421_s18 + $0x2] sm:$0x1] }
  0x13   : > { %v1612_v3 = vld [vmem:[%s421_s18 + $0x3] sm:$0x1]  ;;  %v1614_v4 = vld [vmem:[%s421_s18 + $0x4] sm:$0x1]  ;;  %v1616_v5 = vld [vmem:[%s421_s18 + $0x5] sm:$0x1] }
  0x14   : > { %v1618_v6 = vld [vmem:[%s421_s18 + $0x6] sm:$0x1]  ;;  %v1620_v7 = vld [vmem:[%s421_s18 + $0x7] sm:$0x1] }
  0x15   : > { %v435_v8 = vld [vmem:[%s1783_s0] sm:$0xff]  ;;  %vm439_vm0 = vcmask 261120   ;;  %v436_v10 = vld [vmem:[%s1783_s0 + $0x8] sm:$0xff]  ;;  %v1503_v12 = vmov 32.0  }
  0x16   : > { %v440_v9 = vsel %vm439_vm0, %v435_v8, 0.0  ;;  %v443_v11 = vsel %vm439_vm0, %v436_v10, 0.0  ;;  %1424 = vrcp.f32 %v1503_v12  ;;  %v1422_v43 = vld [vmem:[%s1790_s7] ss:$0 sm:$0xff]  ;;  %v1423_v46 = vld [vmem:[%s1790_s7 + $0x1] ss:$0 sm:$0xff] }
  0x17   : > { %441 = vadd.xlane.f32.xlu0 %v440_v9 }
  0x1c   : > { %v1425_v13 = vpop.eup %1424 }
  0x1d   : > { %v447_v14 = vmul.f32 32.0, %v1425_v13  ;;  %vm451_vm1 = vweird.f32 %v1425_v13 }
  0x1f   : > { %444 = vadd.xlane.f32.xlu0 %v443_v11  ;;  %v448_v15 = vsub.f32 1.0, %v447_v14 }
  0x21   : > { %v449_v16 = vmul.f32 %v1425_v13, %v448_v15 }
  0x23   : > { %v450_v17 = vadd.f32 %v1425_v13, %v449_v16 }
  0x25   : > { %v452_v18 = vsel %vm451_vm1, %v1425_v13, %v450_v17 }
  0x8a   : > { %v442_v19 = vpop.xlane.xlu0 %441 }
  0x8b   : > { %v453_v20 = vmul.f32 %v452_v18, %v442_v19 }
  0x8d   : > { %v455_v21 = vsub.f32 %v435_v8, %v453_v20 }
  0x8f   : > { %v457_v22 = vmul.f32 %v455_v21, %v455_v21 }
  0x91   : > { %v459_v23 = vsel %vm439_vm0, %v457_v22, 0.0 }
  0x92   : > { %460 = vadd.xlane.f32.xlu1 %v459_v23  ;;  %v445_v24 = vpop.xlane.xlu0 %444 }
  0x93   : > { %v454_v25 = vmul.f32 %v452_v18, %v445_v24 }
  0x95   : > { %v456_v26 = vsub.f32 %v436_v10, %v454_v25 }
  0x97   : > { %v458_v27 = vmul.f32 %v456_v26, %v456_v26 }
  0x99   : > { %v462_v28 = vsel %vm439_vm0, %v458_v27, 0.0 }
  0x9a   : > { %463 = vadd.xlane.f32.xlu1 %v462_v28 }
 0x105   : > { %v461_v29 = vpop.xlane.xlu1 %460 }
 0x106   : > { %v465_v30 = vmul.f32 %v461_v29, %v452_v18 }
 0x108   : > { %v467_v31 = vadd.f32 1e-12, %v465_v30 }
 0x10a   : > { %1426 = vrsqrt.f32 %v467_v31  ;;  %vm475_vm3 = vweird.f32 %v467_v31 }
 0x10d   : > { %v464_v32 = vpop.xlane.xlu1 %463 }
 0x10e   : > { %v466_v33 = vmul.f32 %v464_v32, %v452_v18 }
 0x110   : > { %v1427_v34 = vpop.eup %1426  ;;  %v468_v35 = vadd.f32 1e-12, %v466_v33 }
 0x111   : > { %v470_v36 = vmul.f32 %v1427_v34, %v467_v31  ;;  %vm476_vm2 = vweird.f32 %v1427_v34 }
 0x112   : > { %1428 = vrsqrt.f32 %v468_v35  ;;  %vm477_vm4 = vmor %vm475_vm3, %vm476_vm2  ;;  %vm485_vm6 = vweird.f32 %v468_v35 }
 0x113   : > { %v471_v37 = vmul.f32 %v1427_v34, %v470_v36 }
 0x115   : > { %v472_v38 = vmul.f32 0.5, %v471_v37 }
 0x117   : > { %v473_v39 = vsub.f32 1.5, %v472_v38 }
 0x118   : > { %v1429_v40 = vpop.eup %1428 }
 0x119   : > { %v474_v41 = vmul.f32 %v1427_v34, %v473_v39  ;;  %v480_v42 = vmul.f32 %v1429_v40, %v468_v35  ;;  %vm486_vm5 = vweird.f32 %v1429_v40 }
 0x11a   : > { %vm487_vm7 = vmor %vm485_vm6, %vm486_vm5 }
 0x11b   : > { %v478_v44 = vsel %vm477_vm4, %v1427_v34, %v474_v41  ;;  %v481_v45 = vmul.f32 %v1429_v40, %v480_v42 }
 0x11c   : > { %v489_v47 = vmul.f32 %v478_v44, %v455_v21 }
 0x11d   : > { %v482_v48 = vmul.f32 0.5, %v481_v45 }
 0x11e   : > { %v492_v49 = vmul.f32 %v1422_v43, %v489_v47 }
 0x11f   : > { %v483_v50 = vsub.f32 1.5, %v482_v48 }
 0x120   : > { %v495_v51 = vadd.f32 %v1423_v46, %v492_v49 }
 0x121   : > { %v484_v52 = vmul.f32 %v1429_v40, %v483_v50 }
 0x122   : > { %497 = vst.msk [vmem:[#allocation2] sm:$0xff] %vm439_vm0, %v495_v51 }
 0x123   : > { %v488_v53 = vsel %vm487_vm7, %v1429_v40, %v484_v52 }
 0x124   : > { %v490_v54 = vmul.f32 %v488_v53, %v456_v26 }
 0x126   : > { %v493_v55 = vmul.f32 %v1422_v43, %v490_v54 }
 0x128   : > { %v496_v56 = vadd.f32 %v1423_v46, %v493_v55 }
 0x12a   : > { %498 = vst.msk [vmem:[#allocation2 + $0x8] sm:$0xff] %vm439_vm0, %v496_v56 }
 0x12b PF: > { %v1387_v57 = vld [vmem:[%s1586_s20 + $0x8] sm:$0xff]  ;;  %v1386_v58 = vld [vmem:[%s1586_s20] sm:$0xff]  ;;  %vm519_vm8 = vcmask 261120   ;;  %v506_v62 = vperm.slane %v1606_v0, 0  ;;  %s1504_s27 = smov 96   ;;  %vm591_vm9 = vcmask 1043456  }
 0x12c   : > { %529 = vmatpush.bf16.msra.mxu0 %v1387_v57  ;;  %v1643_v59 = vld [vmem:[#allocation2] sm:$0xff]  ;;  %vm587_vm10 = vcmask 64512   ;;  %vm609_vm11 = vcmask 130048   ;;  %v1666_v24 = vld [vmem:[%s1784_s1 + $0x8] sm:$0xff]  ;;  %s1505_s12 = smov 64   ;;  %s1506_s18 = smov 120  }
 0x12d   : > { %v1659_v20 = vld [vmem:[%s1784_s1] sm:$0xff]  ;;  %s1507_s15 = smov 112   ;;  %s1508_s16 = smov 104   ;;  %vm879_vm12 = vcmask 195584   ;;  %vm1063_vm4 = vcmask 523264  }
 0x12e   : > { %s1509_s17 = smov 56   ;;  %s1510_s19 = smov 40  }
 0x12f   : > { %s1511_s21 = smov 48   ;;  %s1512_s22 = smov 8  }
 0x130   : > { %530 = vmatpush.bf16.msra.mxu0 %v1386_v58  ;;  %s1513_s24 = smov 24   ;;  %s1514_s25 = smov 16  }
 0x131   : > { %v1645_v60 = vld [vmem:[#allocation2 + $0x8] sm:$0xff]  ;;  %p1361_p5 = scmp.ne.s32.totalorder %s1577_s14, 1 }
 0x132   : > { %v501_v61 = vpack.c.bf16 %v1645_v60, %v1643_v59 }
 0x134   : > { %1317 = vmatmul.msk.bf16.vlgmr.msra.gmra.mxu0 %vm519_vm8, %v501_v61 }
 0x1b1   : > { %v532_v63 = vpop.f32.mrf.mxu0 }
 0x1b2   : > { %v533_v8 = vadd.f32 %v532_v63, %v506_v62 }
 0x1b4   : > { %541 = vrot.lane.b32.xlu0 %v533_v8, %s1504_s27  ;;  %v537_v10 = vpack.c.bf16 %v533_v8, %v533_v8 }
 0x1b6   : > { %v584_v13 = vunpack.c.l.b16 %v537_v10 }
 0x1b9   : > { %v534_v9 = vpop.f32.mrf.mxu0 }
 0x1ba   : > { %v535_v11 = vadd.f32 %v534_v9, %v506_v62 }
 0x1bc   : > { %v538_v12 = vpack.c.bf16 %v535_v11, %v535_v11  ;;  %543 = vrot.lane.b32.xlu0 %v535_v11, %s1504_s27 }
 0x1be   : > { %v585_v14 = vunpack.c.l.b16 %v538_v12 }
 0x1c0   : > { %v1651_v15 = vpack.c.b16 %v585_v14, %v584_v13 }
 0x226   : > { %v542_v16 = vpop.permute.xlu0 %541 }
 0x227   : > { %547 = vxpose.xlu1.b32.start [1/2] (short) (narrow) %v542_v16, 32 }
 0x22e   : > { %v544_v17 = vpop.permute.xlu0 %543 }
 0x22f   : > { %548 = vxpose.xlu1.b32.end [2/2] (short) (narrow) %v544_v17, 32 }
 0x2cb   : > { %v563_v18 = vpop.trf.xlu1 }
 0x2cc   : > { %v581_v0 = vpack.c.bf16 %v563_v18, %v563_v18 }
 0x2ce   : > { %v593_v19 = vsel %vm591_vm9, %v581_v0, 0 }
 0x2cf   : > { %602 = vmatpush.bf16.msra.mxu1 %v593_v19 }
 0x2d2   : > { %1318 = vmatmul.msk.bf16.vlgmr.msra.gmra.mxu1 %vm587_vm10, %v1651_v15 }
 0x2d3   : > { %v564_v28 = vpop.trf.xlu1 }
 0x2d4   : > { %v653_v29 = vpack.c.bf16 %v564_v28, %v564_v28 }
 0x2d6   : > { %v660_v30 = vsel %vm591_vm9, %v653_v29, 0 }
 0x2d7   : > { %669 = vmatpush.bf16.msra.mxu3 %v660_v30 }
 0x2db   : > { %v565_v31 = vpop.trf.xlu1 }
 0x2dc   : > { %v719_v42 = vpack.c.bf16 %v565_v31, %v565_v31 }
 0x2de   : > { %v726_v44 = vsel %vm591_vm9, %v719_v42, 0 }
 0x2e3   : > { %v566_v34 = vpop.trf.xlu1 }
 0x2e4   : > { %v785_v35 = vpack.c.bf16 %v566_v34, %v566_v34 }
 0x2e6   : > { %v792_v37 = vsel %vm591_vm9, %v785_v35, 0 }
 0x2e7   : > { %801 = vmatpush.bf16.msrb.mxu0 %v792_v37 }
 0x34f   : > { %v604_v21 = vpop.f32.mrf.mxu1 }
 0x350   : > { %v605_v22 = vadd.f32 %v604_v21, %v1659_v20 }
 0x352   : > { %v610_v23 = vsel %vm609_vm11, %v605_v22, -inf }
 0x353   : > { %611 = vmax.xlane.f32.xlu2 %v610_v23 }
 0x357   : > { %v606_v25 = vpop.f32.mrf.mxu1 }
 0x358   : > { %v607_v26 = vadd.f32 %v606_v25, %v1666_v24 }
 0x35a   : > { %v613_v27 = vsel %vm609_vm11, %v607_v26, -inf }
 0x35b   : > { %614 = vmax.xlane.f32.xlu2 %v613_v27 }
 0x373   : > { %633 = vrot.lane.b32.xlu2 %v1651_v15, %s1505_s12 }
 0x37b   : > { %654 = vrot.lane.b32.xlu2 %v1651_v15, %s1506_s18 }
 0x383   : > { %720 = vrot.lane.b32.xlu2 %v1651_v15, %s1507_s15 }
 0x38b   : > { %786 = vrot.lane.b32.xlu2 %v1651_v15, %s1508_s16 }
 0x3c6   : > { %v612_v32 = vpop.xlane.xlu2 %611 }
 0x3c7   : > { %v616_v33 = vsub.f32 %v605_v22, %v612_v32 }
 0x3c9   : > { %v618_v36 = vmul.f32 1.442695, %v616_v33 }
 0x3cb   : > { %1445 = vpow2.f32 %v618_v36 }
 0x3ce   : > { %v615_v38 = vpop.xlane.xlu2 %614 }
 0x3cf   : > { %v617_v39 = vsub.f32 %v607_v26, %v615_v38 }
 0x3d1   : > { %v1446_v40 = vpop.eup %1445  ;;  %v620_v41 = vmul.f32 1.442695, %v617_v39 }
 0x3d2   : > { %v622_v43 = vsel %vm609_vm11, %v1446_v40, 0.0 }
 0x3d3   : > { %1447 = vpow2.f32 %v620_v41  ;;  %623 = vadd.xlane.f32.xlu0 %v622_v43 }
 0x3d6   : > { %v634_v45 = vpop.permute.xlu2 %633 }
 0x3d7   : > { %646 = vmatpush.bf16.msra.mxu2 %v634_v45 }
 0x3d9   : > { %v1448_v46 = vpop.eup %1447 }
 0x3da   : > { %v625_v47 = vsel %vm609_vm11, %v1448_v46, 0.0 }
 0x3db   : > { %735 = vmatpush.bf16.msrb.mxu2 %v726_v44  ;;  %626 = vadd.xlane.f32.xlu1 %v625_v47 }
 0x3de   : > { %v655_v48 = vpop.permute.xlu2 %654 }
 0x3df   : > { %1320 = vmatmul.msk.bf16.vlgmr.msra.gmra.mxu3 %vm587_vm10, %v655_v48 }
 0x3e6   : > { %v721_v49 = vpop.permute.xlu2 %720 }
 0x3ee   : > { %v787_v50 = vpop.permute.xlu2 %786 }
 0x3ef   : > { %1324 = vmatmul.msk.bf16.vlgmr.msrb.gmra.mxu0 %vm587_vm10, %v787_v50 }
 0x446   : > { %v624_v51 = vpop.xlane.xlu0 %623 }
 0x447   : > { %1449 = vrcp.f32 %v624_v51 }
 0x44d   : > { %v1450_v53 = vpop.eup %1449 }
 0x44e   : > { %v627_v52 = vpop.xlane.xlu1 %626  ;;  %v630_v55 = vmul.f32 %v1450_v53, %v1446_v40 }
 0x44f   : > { %1451 = vrcp.f32 %v627_v52 }
 0x455   : > { %v1452_v54 = vpop.eup %1451 }
 0x456   : > { %v631_v56 = vmul.f32 %v1452_v54, %v1448_v46 }
 0x458   : > { %v632_v57 = vpack.c.bf16 %v631_v56, %v630_v55 }
 0x45a   : > { %1319 = vmatmul.msk.bf16.vlgmr.msra.gmra.mxu2 %vm609_vm11, %v632_v57 }
 0x462   : > { %v671_v58 = vpop.f32.mrf.mxu3 }
 0x463   : > { %v672_v61 = vadd.f32 %v671_v58, %v1659_v20 }
 0x465   : > { %v676_v62 = vsel %vm609_vm11, %v672_v61, -inf }
 0x466   : > { %677 = vmax.xlane.f32.xlu0 %v676_v62 }
 0x46a   : > { %v673_v63 = vpop.f32.mrf.mxu3  ;;  %1322 = vmatmul.msk.bf16.vlgmr.msrb.gmra.mxu2 %vm587_vm10, %v721_v49 }
 0x46b   : > { %v674_v8 = vadd.f32 %v673_v63, %v1666_v24 }
 0x46c   : > { %v803_v9 = vpop.f32.mrf.mxu0 }
 0x46d   : > { %v804_v10 = vadd.f32 %v803_v9, %v1659_v20  ;;  %v679_v11 = vsel %vm609_vm11, %v674_v8, -inf }
 0x46e   : > { %680 = vmax.xlane.f32.xlu2 %v679_v11 }
 0x46f   : > { %v808_v12 = vsel %vm609_vm11, %v804_v10, -inf }
 0x470   : > { %809 = vmax.xlane.f32.xlu0 %v808_v12 }
 0x474   : > { %v805_v13 = vpop.f32.mrf.mxu0 }
 0x475   : > { %v806_v14 = vadd.f32 %v805_v13, %v1666_v24 }
 0x477   : > { %v811_v16 = vsel %vm609_vm11, %v806_v14, -inf }
 0x478   : > { %812 = vmax.xlane.f32.xlu0 %v811_v16 }
 0x4d9   : > { %v678_v17 = vpop.xlane.xlu0 %677 }
 0x4da   : > { %v682_v18 = vsub.f32 %v672_v61, %v678_v17 }
 0x4dc   : > { %v684_v0 = vmul.f32 1.442695, %v682_v18 }
 0x4dd   : > { %v1691_v19 = vpop.f32.mrf.mxu2 }
 0x4de   : > { %1453 = vpow2.f32 %v684_v0 }
 0x4e1   : > { %v681_v21 = vpop.xlane.xlu2 %680 }
 0x4e2   : > { %v683_v22 = vsub.f32 %v674_v8, %v681_v21 }
 0x4e3   : > { %v810_v23 = vpop.xlane.xlu0 %809 }
 0x4e4   : > { %v1454_v25 = vpop.eup %1453  ;;  %v686_v26 = vmul.f32 1.442695, %v683_v22 }
 0x4e5   : > { %v1693_v27 = vpop.f32.mrf.mxu2  ;;  %v688_v28 = vsel %vm609_vm11, %v1454_v25, 0.0 }
 0x4e6   : > { %1455 = vpow2.f32 %v686_v26  ;;  %689 = vadd.xlane.f32.xlu0 %v688_v28 }
 0x4eb   : > { %v813_v29 = vpop.xlane.xlu0 %812 }
 0x4ec   : > { %v1456_v30 = vpop.eup %1455  ;;  %v815_v31 = vsub.f32 %v806_v14, %v813_v29 }
 0x4ed   : > { %v737_v32 = vpop.f32.mrf.mxu2  ;;  %v691_v33 = vsel %vm609_vm11, %v1456_v30, 0.0 }
 0x4ee   : > { %v818_v34 = vmul.f32 1.442695, %v815_v31  ;;  %v738_v35 = vadd.f32 %v737_v32, %v1659_v20  ;;  %692 = vadd.xlane.f32.xlu2 %v691_v33  ;;  %v814_v20 = vsub.f32 %v804_v10, %v810_v23  ;;  %v1389_v33 = vld [vmem:[%s1591_s23 + $0x8] sm:$0xff] }
 0x4ef   : > { %909 = vmatpush.bf16.msra.mxu2 %v1389_v33 }
 0x4f0   : > { %1457 = vpow2.f32 %v818_v34  ;;  %v742_v36 = vsel %vm609_vm11, %v738_v35, -inf  ;;  %v816_v42 = vmul.f32 1.442695, %v814_v20 }
 0x4f1   : > { %743 = vmax.xlane.f32.xlu0 %v742_v36 }
 0x4f2   : > { %1459 = vpow2.f32 %v816_v42 }
 0x4f5   : > { %v739_v37 = vpop.f32.mrf.mxu2 }
 0x4f6   : > { %v1458_v38 = vpop.eup %1457  ;;  %v740_v39 = vadd.f32 %v739_v37, %v1666_v24  ;;  %v1388_v37 = vld [vmem:[%s1591_s23] sm:$0xff] }
 0x4f7   : > { %v823_v40 = vsel %vm609_vm11, %v1458_v38, 0.0  ;;  %910 = vmatpush.bf16.msra.mxu2 %v1388_v37 }
 0x4f8   : > { %824 = vadd.xlane.f32.xlu1 %v823_v40  ;;  %v745_v41 = vsel %vm609_vm11, %v740_v39, -inf  ;;  %v1460_v43 = vpop.eup %1459 }
 0x4f9   : > { %746 = vmax.xlane.f32.xlu0 %v745_v41  ;;  %v820_v44 = vsel %vm609_vm11, %v1460_v43, 0.0 }
 0x50d   : > { %699 = vrot.lane.b32.xlu0 %v1651_v15, %s1509_s17 }
 0x511   : > { %831 = vrot.lane.b32.xlu1 %v1651_v15, %s1510_s19 }
 0x537   : > { %821 = vadd.xlane.f32.xlu0 %v820_v44 }
 0x559   : > { %v690_v24 = vpop.xlane.xlu0 %689 }
 0x561   : > { %v693_v53 = vpop.xlane.xlu2 %692 }
 0x564   : > { %v744_v45 = vpop.xlane.xlu0 %743 }
 0x565   : > { %v748_v46 = vsub.f32 %v738_v35, %v744_v45 }
 0x567   : > { %v750_v47 = vmul.f32 1.442695, %v748_v46 }
 0x569   : > { %1461 = vpow2.f32 %v750_v47 }
 0x56b   : > { %v825_v57 = vpop.xlane.xlu1 %824 }
 0x56c   : > { %v747_v48 = vpop.xlane.xlu0 %746 }
 0x56d   : > { %v749_v49 = vsub.f32 %v740_v39, %v747_v48 }
 0x56f   : > { %v1462_v50 = vpop.eup %1461  ;;  %v752_v51 = vmul.f32 1.442695, %v749_v49 }
 0x570   : > { %v754_v52 = vsel %vm609_vm11, %v1462_v50, 0.0 }
 0x571   : > { %1463 = vpow2.f32 %v752_v51  ;;  %755 = vadd.xlane.f32.xlu2 %v754_v52  ;;  %v887_v52 = vperm.slane %v1608_v1, 0 }
 0x572   : > { %1465 = vrcp.f32 %v693_v53 }
 0x573   : > { %1467 = vrcp.f32 %v690_v24 }
 0x574   : > { %1469 = vrcp.f32 %v825_v57 }
 0x577   : > { %v1464_v54 = vpop.eup %1463 }
 0x578   : > { %v757_v55 = vsel %vm609_vm11, %v1464_v54, 0.0  ;;  %v1466_v56 = vpop.eup %1465 }
 0x579   : > { %758 = vadd.xlane.f32.xlu2 %v757_v55  ;;  %v1468_v58 = vpop.eup %1467  ;;  %v697_v61 = vmul.f32 %v1466_v56, %v1456_v30 }
 0x57a   : > { %v696_v62 = vmul.f32 %v1468_v58, %v1454_v25  ;;  %v1470_v11 = vpop.eup %1469 }
 0x57b   : > { %v829_v13 = vmul.f32 %v1470_v11, %v1458_v38 }
 0x57c   : > { %v698_v8 = vpack.c.bf16 %v697_v61, %v696_v62  ;;  %v1515_v61 = vmov 32.0  }
 0x57f   : > { %v700_v63 = vpop.permute.xlu0 %699 }
 0x580   : > { %712 = vmatpush.bf16.msrb.mxu1 %v700_v63 }
 0x583   : > { %v832_v9 = vpop.permute.xlu1 %831  ;;  %1321 = vmatmul.msk.bf16.vlgmr.msrb.gmra.mxu1 %vm609_vm11, %v698_v8 }
 0x584   : > { %844 = vmatpush.bf16.msra.mxu1 %v832_v9 }
 0x591   : > { %765 = vrot.lane.b32.xlu2 %v1651_v15, %s1511_s21 }
 0x5aa   : > { %v822_v10 = vpop.xlane.xlu0 %821 }
 0x5ab   : > { %1471 = vrcp.f32 %v822_v10 }
 0x5b1   : > { %v1472_v12 = vpop.eup %1471 }
 0x5b2   : > { %v828_v14 = vmul.f32 %v1472_v12, %v1460_v43 }
 0x5b4   : > { %v830_v16 = vpack.c.bf16 %v829_v13, %v828_v14 }
 0x5b6   : > { %1325 = vmatmul.msk.bf16.vlgmr.msra.gmra.mxu1 %vm609_vm11, %v830_v16 }
 0x5e4   : > { %v756_v17 = vpop.xlane.xlu2 %755 }
 0x5e5   : > { %1473 = vrcp.f32 %v756_v17 }
 0x5eb   : > { %v1474_v0 = vpop.eup %1473 }
 0x5ec   : > { %v759_v18 = vpop.xlane.xlu2 %758  ;;  %v762_v22 = vmul.f32 %v1474_v0, %v1462_v50 }
 0x5ed   : > { %1475 = vrcp.f32 %v759_v18 }
 0x5ee   : > { %1477 = vrcp.f32 %v1515_v61 }
 0x5f3   : > { %v1476_v21 = vpop.eup %1475 }
 0x5f4   : > { %v763_v23 = vmul.f32 %v1476_v21, %v1464_v54  ;;  %v766_v15 = vpop.permute.xlu2 %765  ;;  %v1478_v62 = vpop.eup %1477  ;;  %v1391_v21 = vld [vmem:[%s1596_s26 + $0x8] sm:$0xff] }
 0x5f5   : > { %778 = vmatpush.bf16.msrb.mxu3 %v766_v15  ;;  %v926_v63 = vmul.f32 32.0, %v1478_v62  ;;  %vm930_vm13 = vweird.f32 %v1478_v62  ;;  %v1390_v15 = vld [vmem:[%s1596_s26] sm:$0xff] }
 0x5f6   : > { %v764_v25 = vpack.c.bf16 %v763_v23, %v762_v22 }
 0x5f7   : > { %v927_v8 = vsub.f32 1.0, %v926_v63 }
 0x5f8   : > { %1323 = vmatmul.msk.bf16.vlgmr.msrb.gmra.mxu3 %vm609_vm11, %v764_v25 }
 0x5f9   : > { %v928_v1 = vmul.f32 %v1478_v62, %v927_v8  ;;  %1003 = vmatpush.bf16.msra.mxu3 %v1391_v21 }
 0x5fb   : > { %v929_v9 = vadd.f32 %v1478_v62, %v928_v1 }
 0x5fd   : > { %1004 = vmatpush.bf16.msra.mxu3 %v1390_v15 }
 0x600   : > { %v714_v26 = vpop.f32.mrf.mxu1 }
 0x608   : > { %v716_v28 = vpop.f32.mrf.mxu1 }
 0x609   : > { %v1430_v29 = vpack.i.bf16 %v716_v28, %v714_v26 }
 0x60b   : > { %1431 = vrot.lane.b32.xlu2 %v1430_v29, %s1512_s22 }
 0x633   : > { %v846_v30 = vpop.f32.mrf.mxu1 }
 0x63b   : > { %v848_v31 = vpop.f32.mrf.mxu1 }
 0x63c   : > { %v1440_v32 = vpack.i.bf16 %v848_v31, %v846_v30 }
 0x63e   : > { %1441 = vrot.lane.b32.xlu2 %v1440_v32, %s1513_s24 }
 0x665   : > { %v1432_v38 = vpop.permute.xlu2 %1431 }
 0x666   : > { %v1434_v39 = vunpack.i.h.bf16 %v1432_v38  ;;  %v1433_v40 = vunpack.i.l.bf16 %v1432_v38 }
 0x668   : > { %v876_v44 = vsel %vm587_vm10, %v1693_v27, %v1434_v39  ;;  %v875_v24 = vsel %vm587_vm10, %v1691_v19, %v1433_v40 }
 0x67b   : > { %v780_v34 = vpop.f32.mrf.mxu3 }
 0x683   : > { %v782_v35 = vpop.f32.mrf.mxu3 }
 0x684   : > { %v1435_v36 = vpack.i.bf16 %v782_v35, %v780_v34 }
 0x686   : > { %1436 = vrot.lane.b32.xlu1 %v1435_v36, %s1514_s25 }
 0x698   : > { %v1442_v41 = vpop.permute.xlu2 %1441 }
 0x699   : > { %v1444_v45 = vunpack.i.h.bf16 %v1442_v41  ;;  %v1443_v46 = vunpack.i.l.bf16 %v1442_v41 }
 0x6f8   : > { %v1437_v20 = vpop.permute.xlu1 %1436 }
 0x6f9   : > { %v1439_v42 = vunpack.i.h.bf16 %v1437_v20  ;;  %v1438_v43 = vunpack.i.l.bf16 %v1437_v20  ;;  %v970_v20 = vperm.slane %v1610_v2, 0  ;;  %v1394_v2 = vld [vmem:[%s1601_s29 + $0x10] sm:$0xff] }
 0x6fb   : > { %v877_v47 = vsel %vm609_vm11, %v875_v24, %v1438_v43  ;;  %v878_v48 = vsel %vm609_vm11, %v876_v44, %v1439_v42  ;;  %v973_v24 = vperm.slane %v1612_v3, 0 }
 0x6fc   : > { %v880_v49 = vsel %vm879_vm12, %v877_v47, %v1443_v46  ;;  %v881_v50 = vsel %vm879_vm12, %v878_v48, %v1444_v45 }
 0x6fd   : > { %v882_v51 = vpack.c.bf16 %v881_v50, %v880_v49 }
 0x6ff   : > { %1334 = vmatmul.msk.bf16.vlgmr.msra.gmra.mxu2 %vm519_vm8, %v882_v51  ;;  %v1395_v51 = vld [vmem:[%s1601_s29 + $0x18] sm:$0xff] }
 0x700   : > { %1071 = vmatpush.bf16.msra.mxu0 %v1395_v51  ;;  %v1127_v51 = vperm.slane %v1618_v6, 0 }
 0x704   : > { %1072 = vmatpush.bf16.msra.mxu0 %v1394_v2 }
 0x782   : > { %v912_v53 = vpop.f32.mrf.mxu2 }
 0x783   : > { %v913_v54 = vadd.f32 %v912_v53, %v887_v52  ;;  %v981_v53 = vperm.slane %v1614_v4, 0 }
 0x785   : > { %v917_v27 = vadd.f32 %v913_v54, %v1643_v59  ;;  %v1725_v59 = vsel %vm930_vm13, %v1478_v62, %v929_v9  ;;  %v1392_v54 = vld [vmem:[%s1601_s29] sm:$0xff] }
 0x787   : > { %v919_v55 = vsel %vm519_vm8, %v917_v27, 0.0 }
 0x788   : > { %920 = vadd.xlane.f32.xlu0 %v919_v55 }
 0x78a   : > { %v914_v19 = vpop.f32.mrf.mxu2 }
 0x78b   : > { %v915_v56 = vadd.f32 %v914_v19, %v887_v52  ;;  %v1393_v52 = vld [vmem:[%s1601_s29 + $0x8] sm:$0xff] }
 0x78c   : > { %1073 = vmatpush.bf16.msra.mxu0 %v1393_v52 }
 0x78d   : > { %v918_v57 = vadd.f32 %v915_v56, %v1645_v60 }
 0x78f   : > { %v922_v58 = vsel %vm519_vm8, %v918_v57, 0.0 }
 0x790   : > { %923 = vadd.xlane.f32.xlu1 %v922_v58  ;;  %1074 = vmatpush.bf16.msra.mxu0 %v1392_v54 }
 0x7fb   : > { %v921_v10 = vpop.xlane.xlu0 %920 }
 0x7fc   : > { %v932_v11 = vmul.f32 %v1725_v59, %v921_v10 }
 0x7fe   : > { %v934_v12 = vsub.f32 %v917_v27, %v932_v11 }
 0x800   : > { %v936_v60 = vmul.f32 %v934_v12, %v934_v12 }
 0x802   : > { %v938_v13 = vsel %vm519_vm8, %v936_v60, 0.0 }
 0x803   : > { %v924_v14 = vpop.xlane.xlu1 %923  ;;  %939 = vadd.xlane.f32.xlu2 %v938_v13 }
 0x804   : > { %v933_v16 = vmul.f32 %v1725_v59, %v924_v14 }
 0x806   : > { %v935_v17 = vsub.f32 %v918_v57, %v933_v16 }
 0x808   : > { %v937_v18 = vmul.f32 %v935_v17, %v935_v17 }
 0x80a   : > { %v941_v0 = vsel %vm519_vm8, %v937_v18, 0.0 }
 0x80b   : > { %942 = vadd.xlane.f32.xlu0 %v941_v0  ;;  %v1038_v0 = vperm.slane %v1616_v5, 0 }
 0x876   : > { %v940_v22 = vpop.xlane.xlu2 %939 }
 0x877   : > { %v944_v23 = vmul.f32 %v940_v22, %v1725_v59 }
 0x879   : > { %v946_v25 = vadd.f32 1e-12, %v944_v23 }
 0x87b   : > { %1479 = vrsqrt.f32 %v946_v25  ;;  %vm954_vm15 = vweird.f32 %v946_v25 }
 0x87e   : > { %v943_v26 = vpop.xlane.xlu0 %942 }
 0x87f   : > { %v945_v28 = vmul.f32 %v943_v26, %v1725_v59 }
 0x881   : > { %v1480_v29 = vpop.eup %1479  ;;  %v947_v30 = vadd.f32 1e-12, %v945_v28 }
 0x882   : > { %v949_v31 = vmul.f32 %v1480_v29, %v946_v25  ;;  %vm955_vm14 = vweird.f32 %v1480_v29 }
 0x883   : > { %1481 = vrsqrt.f32 %v947_v30  ;;  %vm956_vm0 = vmor %vm954_vm15, %vm955_vm14  ;;  %vm964_vm2 = vweird.f32 %v947_v30 }
 0x884   : > { %v950_v32 = vmul.f32 %v1480_v29, %v949_v31 }
 0x886   : > { %v951_v33 = vmul.f32 0.5, %v950_v32 }
 0x888   : > { %v952_v34 = vsub.f32 1.5, %v951_v33 }
 0x889   : > { %v1482_v35 = vpop.eup %1481 }
 0x88a   : > { %v953_v36 = vmul.f32 %v1480_v29, %v952_v34  ;;  %v959_v37 = vmul.f32 %v1482_v35, %v947_v30  ;;  %vm965_vm1 = vweird.f32 %v1482_v35 }
 0x88b   : > { %vm966_vm3 = vmor %vm964_vm2, %vm965_vm1 }
 0x88c   : > { %v960_v38 = vmul.f32 %v1482_v35, %v959_v37  ;;  %v957_v39 = vsel %vm956_vm0, %v1480_v29, %v953_v36 }
 0x88d   : > { %v968_v42 = vmul.f32 %v957_v39, %v934_v12 }
 0x88e   : > { %v961_v40 = vmul.f32 0.5, %v960_v38 }
 0x88f   : > { %v971_v45 = vmul.f32 %v970_v20, %v968_v42 }
 0x890   : > { %v962_v41 = vsub.f32 1.5, %v961_v40 }
 0x891   : > { %v974_v48 = vadd.f32 %v973_v24, %v971_v45 }
 0x892   : > { %v963_v43 = vmul.f32 %v1482_v35, %v962_v41 }
 0x894   : > { %v967_v44 = vsel %vm966_vm3, %v1482_v35, %v963_v43 }
 0x895   : > { %v969_v46 = vmul.f32 %v967_v44, %v935_v17 }
 0x897   : > { %v972_v47 = vmul.f32 %v970_v20, %v969_v46 }
 0x899   : > { %v975_v49 = vadd.f32 %v973_v24, %v972_v47 }
 0x89b   : > { %v976_v50 = vpack.c.bf16 %v975_v49, %v974_v48 }
 0x89d   : > { %1343 = vmatmul.msk.bf16.vlgmr.msra.gmra.mxu3 %vm519_vm8, %v976_v50 }
 0x920   : > { %v1006_v27 = vpop.f32.mrf.mxu3 }
 0x921   : > { %v1007_v55 = vadd.f32 %v1006_v27, %v981_v53 }
 0x923   : > { %v1011_v3 = vmul.f32 %v1007_v55, %v1007_v55 }
 0x925   : > { %v1013_v19 = vmul.f32 %v1011_v3, %v1007_v55 }
 0x927   : > { %v1015_v56 = vmul.f32 0.044715, %v1013_v19 }
 0x928   : > { %v1008_v57 = vpop.f32.mrf.mxu3 }
 0x929   : > { %v1017_v58 = vadd.f32 %v1015_v56, %v1007_v55  ;;  %v1009_v61 = vadd.f32 %v1008_v57, %v981_v53  ;;  %v1130_v53 = vperm.slane %v1620_v7, 0 }
 0x92b   : > { %v1019_v62 = vmul.f32 0.7978846, %v1017_v58  ;;  %v1012_v63 = vmul.f32 %v1009_v61, %v1009_v61 }
 0x92d   : > { %v1014_v8 = vmul.f32 %v1012_v63, %v1009_v61  ;;  %1483 = vtanh.f32 %v1019_v62 }
 0x92f   : > { %v1016_v1 = vmul.f32 0.044715, %v1014_v8 }
 0x931   : > { %v1018_v9 = vadd.f32 %v1016_v1, %v1009_v61 }
 0x933   : > { %v1020_v10 = vmul.f32 0.7978846, %v1018_v9  ;;  %v1484_v11 = vpop.eup %1483 }
 0x934   : > { %v1023_v4 = vadd.f32 1.0, %v1484_v11 }
 0x935   : > { %1485 = vtanh.f32 %v1020_v10 }
 0x936   : > { %v1025_v60 = vmul.f32 0.5, %v1023_v4 }
 0x938   : > { %v1027_v16 = vmul.f32 %v1025_v60, %v1007_v55 }
 0x93b   : > { %v1486_v12 = vpop.eup %1485 }
 0x93c   : > { %v1024_v13 = vadd.f32 1.0, %v1486_v12 }
 0x93e   : > { %v1026_v14 = vmul.f32 0.5, %v1024_v13 }
 0x940   : > { %v1028_v17 = vmul.f32 %v1026_v14, %v1009_v61 }
 0x942   : > { %v1029_v18 = vpack.c.bf16 %v1028_v17, %v1027_v16 }
 0x944   : > { %1360 = vmatmul.msk.bf16.vlgmr.msra.gmra.mxu0 %vm1063_vm4, %v1029_v18 }
 0x9c1   : > { %v1076_v21 = vpop.f32.mrf.mxu0 }
 0x9c2   : > { %v1077_v22 = vadd.f32 %v1076_v21, %v1038_v0 }
 0x9c4   : > { %v1081_v23 = vadd.f32 %v1077_v22, %v974_v48 }
 0x9c6   : > { %v1083_v15 = vsel %vm519_vm8, %v1081_v23, 0.0 }
 0x9c7   : > { %1084 = vadd.xlane.f32.xlu0 %v1083_v15 }
 0x9c9   : > { %v1078_v25 = vpop.f32.mrf.mxu0 }
 0x9ca   : > { %v1079_v26 = vadd.f32 %v1078_v25, %v1038_v0 }
 0x9cc   : > { %v1082_v28 = vadd.f32 %v1079_v26, %v975_v49 }
 0x9ce   : > { %v1086_v29 = vsel %vm519_vm8, %v1082_v28, 0.0 }
 0x9cf   : > { %1087 = vadd.xlane.f32.xlu0 %v1086_v29 }
 0xa3a   : > { %v1085_v30 = vpop.xlane.xlu0 %1084 }
 0xa3b   : > { %v1089_v31 = vmul.f32 %v1085_v30, %v1725_v59 }
 0xa3d   : > { %v1091_v32 = vsub.f32 %v1081_v23, %v1089_v31 }
 0xa3f   : > { %v1093_v33 = vmul.f32 %v1091_v32, %v1091_v32 }
 0xa41   : > { %v1095_v34 = vsel %vm519_vm8, %v1093_v33, 0.0 }
 0xa42   : > { %1096 = vadd.xlane.f32.xlu0 %v1095_v34  ;;  %v1088_v5 = vpop.xlane.xlu0 %1087 }
 0xa43   : > { %v1090_v35 = vmul.f32 %v1088_v5, %v1725_v59 }
 0xa45   : > { %v1092_v36 = vsub.f32 %v1082_v28, %v1090_v35 }
 0xa47   : > { %v1094_v37 = vmul.f32 %v1092_v36, %v1092_v36 }
 0xa49   : > { %v1098_v38 = vsel %vm519_vm8, %v1094_v37, 0.0 }
 0xa4a   : > { %1099 = vadd.xlane.f32.xlu0 %v1098_v38 }
 0xab5   : > { %v1097_v39 = vpop.xlane.xlu0 %1096 }
 0xab6   : > { %v1101_v40 = vmul.f32 %v1097_v39, %v1725_v59 }
 0xab8   : > { %v1103_v41 = vadd.f32 1e-12, %v1101_v40 }
 0xaba   : > { %1487 = vrsqrt.f32 %v1103_v41  ;;  %vm1111_vm6 = vweird.f32 %v1103_v41 }
 0xabd   : > { %v1100_v20 = vpop.xlane.xlu0 %1099 }
 0xabe   : > { %v1102_v42 = vmul.f32 %v1100_v20, %v1725_v59 }
 0xac0   : > { %v1488_v43 = vpop.eup %1487  ;;  %v1104_v44 = vadd.f32 1e-12, %v1102_v42 }
 0xac1   : > { %v1106_v24 = vmul.f32 %v1488_v43, %v1103_v41  ;;  %vm1112_vm5 = vweird.f32 %v1488_v43 }
 0xac2   : > { %1489 = vrsqrt.f32 %v1104_v44  ;;  %vm1113_vm7 = vmor %vm1111_vm6, %vm1112_vm5  ;;  %vm1121_vm10 = vweird.f32 %v1104_v44 }
 0xac3   : > { %v1107_v45 = vmul.f32 %v1488_v43, %v1106_v24 }
 0xac5   : > { %v1108_v46 = vmul.f32 0.5, %v1107_v45 }
 0xac7   : > { %v1109_v47 = vsub.f32 1.5, %v1108_v46 }
 0xac8   : > { %v1490_v48 = vpop.eup %1489 }
 0xac9   : > { %v1110_v49 = vmul.f32 %v1488_v43, %v1109_v47  ;;  %v1116_v50 = vmul.f32 %v1490_v48, %v1104_v44  ;;  %vm1122_vm9 = vweird.f32 %v1490_v48 }
 0xaca   : > { %vm1123_vm11 = vmor %vm1121_vm10, %vm1122_vm9 }
 0xacb   : > { %v1114_v2 = vsel %vm1113_vm7, %v1488_v43, %v1110_v49  ;;  %v1117_v52 = vmul.f32 %v1490_v48, %v1116_v50 }
 0xacc   : > { %v1125_v59 = vmul.f32 %v1114_v2, %v1091_v32 }
 0xacd   : > { %v1118_v54 = vmul.f32 0.5, %v1117_v52 }
 0xace   : > { %v1128_v27 = vmul.f32 %v1127_v51, %v1125_v59 }
 0xacf   : > { %v1119_v55 = vsub.f32 1.5, %v1118_v54 }
 0xad0   : > { %v1131_v3 = vadd.f32 %v1130_v53, %v1128_v27 }
 0xad1   : > { %v1120_v19 = vmul.f32 %v1490_v48, %v1119_v55 }
 0xad2   : > { %1133 = vst.msk [vmem:[#allocation2] sm:$0xff] %vm519_vm8, %v1131_v3 }
 0xad3   : > { %v1124_v56 = vsel %vm1123_vm11, %v1490_v48, %v1120_v19 }
 0xad4   : > { %v1126_v57 = vmul.f32 %v1124_v56, %v1092_v36 }
 0xad6   : > { %v1129_v58 = vmul.f32 %v1127_v51, %v1126_v57  ;;  %1138 = sbr.rel (%p1361_p5) target bundleno = 3062 (0xbf6), region = 68 }
 0xad8   : > { %v1132_v6 = vadd.f32 %v1130_v53, %v1129_v58 }
 0xada   : > { %1134 = vst.msk [vmem:[#allocation2 + $0x8] sm:$0xff] %vm519_vm8, %v1132_v6 }
 0xadb   : > { %v1397_v7 = vld [vmem:[%s1791_s8 + $0x8] sm:$0xff]  ;;  %v1141_v61 = vld [vmem:[#allocation2] sm:$0x1]  ;;  %vm1146_vm12 = vcmask 1040384   ;;  %v1491_v4 = vld [vmem:[%s1790_s7 + $0x2] ss:$0 sm:$0xff] }
 0xadc   : > { %1175 = vmatpush.bf16.msra.mxu0 %v1397_v7  ;;  %v1396_v63 = vld [vmem:[%s1791_s8] sm:$0xff]  ;;  %v1399_v10 = vld [vmem:[%s1792_s9 + $0x8] sm:$0xff]  ;;  %vm1217_vm13 = vcmask 25600  }
 0xadd   : > { %1210 = vmatpush.bf16.msra.mxu1 %v1399_v10  ;;  %v1398_v11 = vld [vmem:[%s1792_s9] sm:$0xff] }
 0xade   : > { %v1492_v17 = vld [vmem:[%s1790_s7 + $0x3] ss:$0 sm:$0xff] }
 0xae0   : > { %1176 = vmatpush.bf16.msra.mxu0 %v1396_v63 }
 0xae1   : > { %v1142_v62 = vld [vmem:[#allocation2 + $0x8] sm:$0x1]  ;;  %1211 = vmatpush.bf16.msra.mxu1 %v1398_v11 }
 0xae2   : > { %v1144_v8 = vrot.slane %v1142_v62, 7 }
 0xae4   : > { %v1147_v1 = vsel %vm1146_vm12, %v1141_v61, %v1144_v8 }
 0xae5   : > { %v1148_v9 = vpack.c.bf16 %v1147_v1, %v1147_v1 }
 0xae7   : > { %1370 = vmatmul.msk.bf16.vlgmr.msra.gmra.mxu0 %vm519_vm8, %v1148_v9 }
 0xb64   : > { %v1178_v12 = vpop.f32.mrf.mxu0 }
 0xb65   : > { %v1179_v60 = vadd.f32 %v1491_v4, %v1178_v12 }
 0xb67   : > { %1493 = vtanh.f32 %v1179_v60 }
 0xb6c   : > { %v1180_v13 = vpop.f32.mrf.mxu0 }
 0xb6d   : > { %v1494_v14 = vpop.eup %1493 }
 0xb6e   : > { %v1183_v16 = vpack.c.bf16 %v1494_v14, %v1494_v14 }
 0xb70   : > { %1379 = vmatmul.msk.bf16.vlgmr.msra.gmra.mxu1 %vm519_vm8, %v1183_v16 }
 0xbed   : > { %v1213_v18 = vpop.f32.mrf.mxu1 }
 0xbee   : > { %v1214_v0 = vadd.f32 %v1492_v17, %v1213_v18 }
 0xbf0   : > { %1218 = vst.msk [vmem:[%s1793_s10] sm:$0x3] %vm1217_vm13, %v1214_v0 }
 0xbf5   : > { %v1215_v21 = vpop.f32.mrf.mxu1 }
 0xbf6 PF: > { %s20_s13 = sadd.s32 1, %s1501_s13  }
 0xbf7   : > { %p17_p6 = scmp.ge.s32.totalorder %s20_s13, 4  }
 0xbf9   :  { %19 = sbr.rel (!%p17_p6) target bundleno = 1 (0x1), region = 106 }

</bundles_post_ra>
